<compile_context>
chip_gen: v6e
topology: v6e:2x2x1
jax: 0.10.0
libtpu: 0.0.40
codegen_flags: <defaults>
</compile_context>

<pallas_src>
import functools

import numpy as np
import jax
import jax.numpy as jnp
from jax.experimental import pallas as pl
from jax.experimental.pallas import tpu as pltpu


def _to2(v):
    if isinstance(v, (tuple, list)):
        return (int(v[0]), int(v[1]))
    return (int(v), int(v))


def _round_up(a, m):
    return -(-a // m) * m


def _vmem_capacity_bytes():
    try:
        return int(pltpu.get_tpu_info().vmem_capacity_bytes)
    except Exception:
        return 64 << 20          # conservative default (v7x per-TC VMEM)


def _pick_t_oh(OH, OW, F_out, itemsize, sub_mult, vmem_cap):
    """Pick the number of oh rows handled per grid step.

    T_OH must divide OH, keep the output block sublane-tileable for this dtype
    ((T_OH*OW) % sub_mult == 0), and fit the per-generation tile budget.  Among
    valid choices prefer 8-aligned T_OH (aligned window loads) and tiles large
    enough to amortize the ~0.35us per-grid-step overhead.
    """
    big_vmem = vmem_cap >= (100 << 20)          # v5e/v6e: 128 MiB, v7x: 64 MiB
    target_rows = 2048 if big_vmem else 1024
    max_tile_bytes = (8 << 20) if big_vmem else (2 << 20)

    legal = [t for t in range(1, OH + 1)
             if OH % t == 0 and (t * OW) % sub_mult == 0]
    if not legal:
        raise NotImplementedError(
            f"Stride2D pallas kernel needs a divisor T_OH of OH with "
            f"(T_OH*OW) % {sub_mult} == 0; got OH={OH}, OW={OW}")
    fits = [t for t in legal if t * OW * F_out * itemsize <= max_tile_bytes]
    if not fits:
        return min(legal)
    reach = [t for t in fits if t * OW >= target_rows]
    if reach:
        aligned = [t for t in reach if t % 8 == 0 or t == OH]
        return min(aligned) if aligned else min(reach)
    aligned = [t for t in fits if t % 8 == 0 or t == OH]
    return max(aligned) if aligned else max(fits)


def _stride2d_kernel(x_ref, o_ref, *, C, KH, KW, SH, SW, OW, T_OH, F_out,
                     CH_CHUNK):
    """One grid step handles one (n, oh-block) pair.

    x_ref: (C, Hp, Wp) -- padded image slab resident for batch element n.
    o_ref: (T_OH*OW, F_out) -- this block's output rows (F_out >= C*KH*KW).
    """
    F = C * KH * KW
    R = T_OH * OW
    oh0 = pl.program_id(1) * T_OH
    if T_OH % 8 == 0:
        oh0 = pl.multiple_of(oh0, 8)

    chunk_tiles = []
    for c0 in range(0, C, CH_CHUNK):
        c1 = min(c0 + CH_CHUNK, C)
        # One (T_OH, OW) slab load per (c, i, j) tap — single 2D slices of the
        # resident ref (no per-oh single-sublane pieces, far fewer slice ops).
        taps = []
        for c in range(c0, c1):
            for i in range(KH):
                rows = pl.ds(oh0 + i, T_OH)
                for j in range(KW):
                    if SH == 1:
                        taps.append(x_ref[c, rows, j * SW:j * SW + OW])
                    else:
                        # TODO(synk): audit lowering of the lane-strided load
                        # for SH > 1 (not exercised by the demo config).
                        taps.append(x_ref[c, rows, pl.ds(j * SW, OW, stride=SH)])
        S = jnp.stack(taps, axis=0)                       # (Fc, T_OH, OW)
        # Lane-preserving emulation of S.reshape(Fc, T_OH*OW), kept as explicit
        # middle-dim slices + one lane concat for Mosaic lowering safety.
        A = jnp.concatenate([S[:, t, :] for t in range(T_OH)], axis=1)  # (Fc, R)
        # ONE coarse relayout per channel chunk (irreducible: output wants the
        # features on lanes while the input keeps W on lanes).
        chunk_tiles.append(A.T)                           # (R, Fc)

    tile = (chunk_tiles[0] if len(chunk_tiles) == 1
            else jnp.concatenate(chunk_tiles, axis=1))    # (R, F)
    if F_out > F:
        # Lane-dense output path: zero columns up to the padded feature width so
        # every vst / write DMA row is dense; the consumer ignores cols >= F.
        tile = jnp.concatenate(
            [tile, jnp.zeros((R, F_out - F), tile.dtype)], axis=1)
    # Single full-width store per grid step; the HBM write-back of this block is
    # one contiguous DMA (rows span the whole feature width).
    o_ref[...] = tile.astype(o_ref.dtype)


def stride2d_forward(x, in_features, kernel_size, stride=None, padding=None,
                     reshape_output=True, pad_features_to=None):
    """JAX/Pallas equivalent of Stride2D.forward.

    pad_features_to: optional lane-dense output width (e.g. 128).  When set,
      the returned array has that many columns; the first C*KH*KW columns are
      the module's output and the rest zeros (for consumers that can ignore the
      padding).  Default None returns the exact module output.
    """
    KH, KW = _to2(kernel_size)
    SH, SW = _to2(stride if stride is not None else 1)
    # F.pad(x, (p0, p0, p1, p1)) pads W by p0/side and H by p1/side.
    PW, PH = _to2(padding if padding is not None else 0)

    N, C, H, W = map(int, x.shape)
    assert C == in_features

    Hp, Wp = H + 2 * PH, W + 2 * PW
    # NOTE: OH uses SH although rows advance by 1 per oh, and OW uses SW although
    # columns advance by SH per ow — this matches the module's as_strided setup.
    OH = (Hp - (KH - 1)) // SH
    OW = (Wp - (KW - 1)) // SW
    F = C * KH * KW
    itemsize = int(np.dtype(x.dtype).itemsize)

    # Guard the exotic SH != SW combos where torch.as_strided would wrap into the
    # next storage row; always satisfied for the common SH == SW case.
    assert (OW - 1) * SH + (KW - 1) * SW <= Wp - 1, (
        "unsupported stride combo: strided window would wrap into the next row "
        "(torch.as_strided row-wrap semantics not implemented)")

    if pad_features_to is not None:
        if not reshape_output:
            raise ValueError("pad_features_to requires reshape_output=True")
        F_out = max(F, int(pad_features_to))
    else:
        F_out = F

    # Padding is applied once in the wrapper (no per-step in-kernel lane-axis
    # zero concat); the input re-read is small next to the KH*KW-amplified
    # output traffic of this im2col.
    # TODO(synk): zero-copy alternative: DMA x[n] into the interior of a zeroed
    # VMEM scratch window (manual P4 pattern).
    x_in = jnp.pad(x, ((0, 0), (0, 0), (PH, PH), (PW, PW))) if (PH or PW) else x

    sub_mult = 8 * max(1, 4 // itemsize)        # f32: 8, bf16: 16, int8/fp8: 32
    vmem_cap = _vmem_capacity_bytes()
    T_OH = _pick_t_oh(OH, OW, F_out, itemsize, sub_mult, vmem_cap)
    nb = OH // T_OH
    R = T_OH * OW

    # Channel chunking bounds the number of tap slabs feeding each stack (vreg /
    # spill pressure) while the final store stays one full-width write.
    tap_vregs = (_round_up(T_OH, 8) // 8) * (_round_up(OW, 128) // 128)
    CH_CHUNK = max(1, min(C, 48 // max(1, KH * KW * tap_vregs)))
    F_chunk = CH_CHUNK * KH * KW

    kernel = functools.partial(
        _stride2d_kernel, C=C, KH=KH, KW=KW, SH=SH, SW=SW, OW=OW, T_OH=T_OH,
        F_out=F_out, CH_CHUNK=CH_CHUNK)

    # Layout-padding-aware VMEM accounting (lanes round to 128, sublanes to 8):
    # double-buffered input slab + output tile plus in-kernel intermediates,
    # clamped to this generation's physical capacity.
    in_tile = C * _round_up(Hp, 8) * _round_up(Wp, 128) * itemsize
    out_tile = _round_up(R, 8) * _round_up(F_out, 128) * itemsize
    interm = (F_chunk * _round_up(T_OH, 8) * _round_up(OW, 128)
              + _round_up(F_chunk, 8) * _round_up(R, 128)
              + 2 * _round_up(R, 8) * _round_up(F_out, 128)) * itemsize
    need = 2 * in_tile + 2 * out_tile + 2 * interm
    vmem_limit = int(min(max(need + (8 << 20), 16 << 20), vmem_cap - (2 << 20)))

    total_rows = N * OH * OW
    in_bytes = int(np.prod(x_in.shape)) * itemsize
    out_bytes = total_rows * F_out * itemsize

    cparams = dict(
        # No carried state across either grid axis -> both parallel (lets a
        # two-TensorCore chip split the oh-block axis even when N == 1).
        # TODO(synk): on v7x (64 MiB VMEM) switch the resident full-image input
        # block to a row-windowed manual DMA (pl.ANY + make_async_copy) or
        # Buffered(1) so real-size images fit and are not re-read per core.
        dimension_semantics=("parallel", "parallel"),
        vmem_limit_bytes=vmem_limit,
    )
    if PH or PW:
        cparams["allow_input_fusion"] = [True]

    out = pl.pallas_call(
        kernel,
        out_shape=jax.ShapeDtypeStruct((total_rows, F_out), x.dtype),
        grid_spec=pltpu.PrefetchScalarGridSpec(
            num_scalar_prefetch=0,
            grid=(N, nb),
            in_specs=[
                # Whole padded image for batch n stays resident across the
                # oh-block axis; its HBM slice is contiguous so the read DMA is
                # one long descriptor.
                # TODO(synk): lane-dense flat presentation for W << 128 images.
                pl.BlockSpec((None, C, Hp, Wp), lambda n, b: (n, 0, 0, 0)),
            ],
            out_specs=pl.BlockSpec((R, F_out), lambda n, b: (n * nb + b, 0)),
        ),
        compiler_params=pltpu.CompilerParams(**cparams),
        cost_estimate=pl.CostEstimate(
            flops=0, transcendentals=0, bytes_accessed=in_bytes + out_bytes),
    )(x_in)

    if reshape_output:
        return out
    # reshape_output=False returns the 6D strided view (N, OH, OW, C, KH, KW).
    return out.reshape(N, OH, OW, C, KH, KW)


def _reference(x, kernel_size, stride, padding):
    """Pure-numpy replica of the PyTorch forward, for verification."""
    x = np.asarray(x)
    KH, KW = _to2(kernel_size)
    SH, SW = _to2(stride if stride is not None else 1)
    p0, p1 = _to2(padding if padding is not None else 0)
    xp = np.pad(x, ((0, 0), (0, 0), (p1, p1), (p0, p0)))
    N, C, Hp, Wp = xp.shape
    OH = (Hp - (KH - 1)) // SH
    OW = (Wp - (KW - 1)) // SW
    out = np.empty((N, OH, OW, C, KH, KW), dtype=xp.dtype)
    for oh in range(OH):
        for ow in range(OW):
            for i in range(KH):
                for j in range(KW):
                    out[:, oh, ow, :, i, j] = xp[:, :, oh + i, ow * SH + j * SW]
    return out.reshape(N * OH * OW, C * KH * KW)


if __name__ == "__main__":
    # Module config (Stride2D has no learnable parameters).
    in_features = 4
    kernel_size = 3
    stride = 1
    padding = 1

    key = jax.random.PRNGKey(0)
    x = jax.random.normal(key, (2, in_features, 16, 16), dtype=jnp.float32)

    ref = _reference(x, kernel_size, stride, padding)

    # Exact (module-semantics) output.
    out = stride2d_forward(x, in_features, kernel_size, stride, padding,
                           reshape_output=True)
    out = jax.block_until_ready(out)
    assert out.shape == ref.shape, (out.shape, ref.shape)
    np.testing.assert_allclose(np.asarray(out), ref, rtol=0, atol=0)

    # Lane-dense (128-wide, zero-padded feature dim) variant per perf review #1;
    # a downstream matmul consumer ignores columns >= C*KH*KW.
    outp = stride2d_forward(x, in_features, kernel_size, stride, padding,
                            reshape_output=True, pad_features_to=128)
    outp = jax.block_until_ready(outp)
    outp_np = np.asarray(outp)
    np.testing.assert_allclose(outp_np[:, :ref.shape[1]], ref, rtol=0, atol=0)
    assert not np.any(outp_np[:, ref.shape[1]:])

    print("KERNEL_OK")
</pallas_src>

<mosaic_0001>
module attributes {stable_mosaic.version = 11 : i64} {
  func.func @_stride2d_kernel(%arg0: i32, %arg1: i32, %arg2: memref<1x4x18x18xf32, #tpu.memory_space<vmem>>, %arg3: memref<256x36xf32, #tpu.memory_space<vmem>>) attributes {dimension_semantics = [#tpu.dimension_semantics<parallel>, #tpu.dimension_semantics<parallel>], iteration_bounds = array<i64: 2, 1>, scalar_prefetch = 0 : i64, scratch_operands = 0 : i64, tpu.core_type = #tpu.core_type<tc>, window_params = [{transform_indices = @transform_0, window_bounds = array<i64: 1, 4, 18, 18>}, {transform_indices = @transform_1, window_bounds = array<i64: 256, 36>}]} {
    %c16_i32 = arith.constant 16 : i32
    %0 = arith.muli %arg1, %c16_i32 : i32
    %1 = tpu.assume_multiple %0, 8 : i32
    %c0_i32 = arith.constant 0 : i32
    %2 = arith.addi %1, %c0_i32 : i32
    %c0 = arith.constant 0 : index
    %c0_0 = arith.constant 0 : index
    %3 = arith.index_cast %2 : i32 to index
    %c0_1 = arith.constant 0 : index
    %4 = vector.load %arg2[%c0, %c0_0, %3, %c0_1] : memref<1x4x18x18xf32, #tpu.memory_space<vmem>>, vector<1x1x16x16xf32>
    %5 = vector.shape_cast %4 : vector<1x1x16x16xf32> to vector<16x16xf32>
    %c0_2 = arith.constant 0 : index
    %c0_3 = arith.constant 0 : index
    %6 = arith.index_cast %2 : i32 to index
    %c1 = arith.constant 1 : index
    %7 = vector.load %arg2[%c0_2, %c0_3, %6, %c1] : memref<1x4x18x18xf32, #tpu.memory_space<vmem>>, vector<1x1x16x16xf32>
    %8 = vector.shape_cast %7 : vector<1x1x16x16xf32> to vector<16x16xf32>
    %c0_4 = arith.constant 0 : index
    %c0_5 = arith.constant 0 : index
    %9 = arith.index_cast %2 : i32 to index
    %c2 = arith.constant 2 : index
    %10 = vector.load %arg2[%c0_4, %c0_5, %9, %c2] : memref<1x4x18x18xf32, #tpu.memory_space<vmem>>, vector<1x1x16x16xf32>
    %11 = vector.shape_cast %10 : vector<1x1x16x16xf32> to vector<16x16xf32>
    %c1_i32 = arith.constant 1 : i32
    %12 = arith.addi %1, %c1_i32 : i32
    %c0_6 = arith.constant 0 : index
    %c0_7 = arith.constant 0 : index
    %13 = arith.index_cast %12 : i32 to index
    %c0_8 = arith.constant 0 : index
    %14 = vector.load %arg2[%c0_6, %c0_7, %13, %c0_8] : memref<1x4x18x18xf32, #tpu.memory_space<vmem>>, vector<1x1x16x16xf32>
    %15 = vector.shape_cast %14 : vector<1x1x16x16xf32> to vector<16x16xf32>
    %c0_9 = arith.constant 0 : index
    %c0_10 = arith.constant 0 : index
    %16 = arith.index_cast %12 : i32 to index
    %c1_11 = arith.constant 1 : index
    %17 = vector.load %arg2[%c0_9, %c0_10, %16, %c1_11] : memref<1x4x18x18xf32, #tpu.memory_space<vmem>>, vector<1x1x16x16xf32>
    %18 = vector.shape_cast %17 : vector<1x1x16x16xf32> to vector<16x16xf32>
    %c0_12 = arith.constant 0 : index
    %c0_13 = arith.constant 0 : index
    %19 = arith.index_cast %12 : i32 to index
    %c2_14 = arith.constant 2 : index
    %20 = vector.load %arg2[%c0_12, %c0_13, %19, %c2_14] : memref<1x4x18x18xf32, #tpu.memory_space<vmem>>, vector<1x1x16x16xf32>
    %21 = vector.shape_cast %20 : vector<1x1x16x16xf32> to vector<16x16xf32>
    %c2_i32 = arith.constant 2 : i32
    %22 = arith.addi %1, %c2_i32 : i32
    %c0_15 = arith.constant 0 : index
    %c0_16 = arith.constant 0 : index
    %23 = arith.index_cast %22 : i32 to index
    %c0_17 = arith.constant 0 : index
    %24 = vector.load %arg2[%c0_15, %c0_16, %23, %c0_17] : memref<1x4x18x18xf32, #tpu.memory_space<vmem>>, vector<1x1x16x16xf32>
    %25 = vector.shape_cast %24 : vector<1x1x16x16xf32> to vector<16x16xf32>
    %c0_18 = arith.constant 0 : index
    %c0_19 = arith.constant 0 : index
    %26 = arith.index_cast %22 : i32 to index
    %c1_20 = arith.constant 1 : index
    %27 = vector.load %arg2[%c0_18, %c0_19, %26, %c1_20] : memref<1x4x18x18xf32, #tpu.memory_space<vmem>>, vector<1x1x16x16xf32>
    %28 = vector.shape_cast %27 : vector<1x1x16x16xf32> to vector<16x16xf32>
    %c0_21 = arith.constant 0 : index
    %c0_22 = arith.constant 0 : index
    %29 = arith.index_cast %22 : i32 to index
    %c2_23 = arith.constant 2 : index
    %30 = vector.load %arg2[%c0_21, %c0_22, %29, %c2_23] : memref<1x4x18x18xf32, #tpu.memory_space<vmem>>, vector<1x1x16x16xf32>
    %31 = vector.shape_cast %30 : vector<1x1x16x16xf32> to vector<16x16xf32>
    %c0_i32_24 = arith.constant 0 : i32
    %32 = arith.addi %1, %c0_i32_24 : i32
    %c0_25 = arith.constant 0 : index
    %c1_26 = arith.constant 1 : index
    %33 = arith.index_cast %32 : i32 to index
    %c0_27 = arith.constant 0 : index
    %34 = vector.load %arg2[%c0_25, %c1_26, %33, %c0_27] : memref<1x4x18x18xf32, #tpu.memory_space<vmem>>, vector<1x1x16x16xf32>
    %35 = vector.shape_cast %34 : vector<1x1x16x16xf32> to vector<16x16xf32>
    %c0_28 = arith.constant 0 : index
    %c1_29 = arith.constant 1 : index
    %36 = arith.index_cast %32 : i32 to index
    %c1_30 = arith.constant 1 : index
    %37 = vector.load %arg2[%c0_28, %c1_29, %36, %c1_30] : memref<1x4x18x18xf32, #tpu.memory_space<vmem>>, vector<1x1x16x16xf32>
    %38 = vector.shape_cast %37 : vector<1x1x16x16xf32> to vector<16x16xf32>
    %c0_31 = arith.constant 0 : index
    %c1_32 = arith.constant 1 : index
    %39 = arith.index_cast %32 : i32 to index
    %c2_33 = arith.constant 2 : index
    %40 = vector.load %arg2[%c0_31, %c1_32, %39, %c2_33] : memref<1x4x18x18xf32, #tpu.memory_space<vmem>>, vector<1x1x16x16xf32>
    %41 = vector.shape_cast %40 : vector<1x1x16x16xf32> to vector<16x16xf32>
    %c1_i32_34 = arith.constant 1 : i32
    %42 = arith.addi %1, %c1_i32_34 : i32
    %c0_35 = arith.constant 0 : index
    %c1_36 = arith.constant 1 : index
    %43 = arith.index_cast %42 : i32 to index
    %c0_37 = arith.constant 0 : index
    %44 = vector.load %arg2[%c0_35, %c1_36, %43, %c0_37] : memref<1x4x18x18xf32, #tpu.memory_space<vmem>>, vector<1x1x16x16xf32>
    %45 = vector.shape_cast %44 : vector<1x1x16x16xf32> to vector<16x16xf32>
    %c0_38 = arith.constant 0 : index
    %c1_39 = arith.constant 1 : index
    %46 = arith.index_cast %42 : i32 to index
    %c1_40 = arith.constant 1 : index
    %47 = vector.load %arg2[%c0_38, %c1_39, %46, %c1_40] : memref<1x4x18x18xf32, #tpu.memory_space<vmem>>, vector<1x1x16x16xf32>
    %48 = vector.shape_cast %47 : vector<1x1x16x16xf32> to vector<16x16xf32>
    %c0_41 = arith.constant 0 : index
    %c1_42 = arith.constant 1 : index
    %49 = arith.index_cast %42 : i32 to index
    %c2_43 = arith.constant 2 : index
    %50 = vector.load %arg2[%c0_41, %c1_42, %49, %c2_43] : memref<1x4x18x18xf32, #tpu.memory_space<vmem>>, vector<1x1x16x16xf32>
    %51 = vector.shape_cast %50 : vector<1x1x16x16xf32> to vector<16x16xf32>
    %c2_i32_44 = arith.constant 2 : i32
    %52 = arith.addi %1, %c2_i32_44 : i32
    %c0_45 = arith.constant 0 : index
    %c1_46 = arith.constant 1 : index
    %53 = arith.index_cast %52 : i32 to index
    %c0_47 = arith.constant 0 : index
    %54 = vector.load %arg2[%c0_45, %c1_46, %53, %c0_47] : memref<1x4x18x18xf32, #tpu.memory_space<vmem>>, vector<1x1x16x16xf32>
    %55 = vector.shape_cast %54 : vector<1x1x16x16xf32> to vector<16x16xf32>
    %c0_48 = arith.constant 0 : index
    %c1_49 = arith.constant 1 : index
    %56 = arith.index_cast %52 : i32 to index
    %c1_50 = arith.constant 1 : index
    %57 = vector.load %arg2[%c0_48, %c1_49, %56, %c1_50] : memref<1x4x18x18xf32, #tpu.memory_space<vmem>>, vector<1x1x16x16xf32>
    %58 = vector.shape_cast %57 : vector<1x1x16x16xf32> to vector<16x16xf32>
    %c0_51 = arith.constant 0 : index
    %c1_52 = arith.constant 1 : index
    %59 = arith.index_cast %52 : i32 to index
    %c2_53 = arith.constant 2 : index
    %60 = vector.load %arg2[%c0_51, %c1_52, %59, %c2_53] : memref<1x4x18x18xf32, #tpu.memory_space<vmem>>, vector<1x1x16x16xf32>
    %61 = vector.shape_cast %60 : vector<1x1x16x16xf32> to vector<16x16xf32>
    %62 = vector.shape_cast %5 : vector<16x16xf32> to vector<1x16x16xf32>
    %63 = vector.shape_cast %8 : vector<16x16xf32> to vector<1x16x16xf32>
    %64 = vector.shape_cast %11 : vector<16x16xf32> to vector<1x16x16xf32>
    %65 = vector.shape_cast %15 : vector<16x16xf32> to vector<1x16x16xf32>
    %66 = vector.shape_cast %18 : vector<16x16xf32> to vector<1x16x16xf32>
    %67 = vector.shape_cast %21 : vector<16x16xf32> to vector<1x16x16xf32>
    %68 = vector.shape_cast %25 : vector<16x16xf32> to vector<1x16x16xf32>
    %69 = vector.shape_cast %28 : vector<16x16xf32> to vector<1x16x16xf32>
    %70 = vector.shape_cast %31 : vector<16x16xf32> to vector<1x16x16xf32>
    %71 = vector.shape_cast %35 : vector<16x16xf32> to vector<1x16x16xf32>
    %72 = vector.shape_cast %38 : vector<16x16xf32> to vector<1x16x16xf32>
    %73 = vector.shape_cast %41 : vector<16x16xf32> to vector<1x16x16xf32>
    %74 = vector.shape_cast %45 : vector<16x16xf32> to vector<1x16x16xf32>
    %75 = vector.shape_cast %48 : vector<16x16xf32> to vector<1x16x16xf32>
    %76 = vector.shape_cast %51 : vector<16x16xf32> to vector<1x16x16xf32>
    %77 = vector.shape_cast %55 : vector<16x16xf32> to vector<1x16x16xf32>
    %78 = vector.shape_cast %58 : vector<16x16xf32> to vector<1x16x16xf32>
    %79 = vector.shape_cast %61 : vector<16x16xf32> to vector<1x16x16xf32>
    %80 = tpu.concatenate %62, %63, %64, %65, %66, %67, %68, %69, %70, %71, %72, %73, %74, %75, %76, %77 in 0 : vector<1x16x16xf32>, vector<1x16x16xf32>, vector<1x16x16xf32>, vector<1x16x16xf32>, vector<1x16x16xf32>, vector<1x16x16xf32>, vector<1x16x16xf32>, vector<1x16x16xf32>, vector<1x16x16xf32>, vector<1x16x16xf32>, vector<1x16x16xf32>, vector<1x16x16xf32>, vector<1x16x16xf32>, vector<1x16x16xf32>, vector<1x16x16xf32>, vector<1x16x16xf32> -> vector<16x16x16xf32>
    %81 = tpu.concatenate %78, %79 in 0 : vector<1x16x16xf32>, vector<1x16x16xf32> -> vector<2x16x16xf32>
    %82 = tpu.concatenate %80, %81 in 0 : vector<16x16x16xf32>, vector<2x16x16xf32> -> vector<18x16x16xf32>
    %83 = vector.extract_strided_slice %82 {offsets = [0, 0, 0], sizes = [18, 1, 16], strides = [1, 1, 1]} : vector<18x16x16xf32> to vector<18x1x16xf32>
    %84 = vector.shape_cast %83 : vector<18x1x16xf32> to vector<18x16xf32>
    %85 = vector.extract_strided_slice %82 {offsets = [0, 1, 0], sizes = [18, 1, 16], strides = [1, 1, 1]} : vector<18x16x16xf32> to vector<18x1x16xf32>
    %86 = vector.shape_cast %85 : vector<18x1x16xf32> to vector<18x16xf32>
    %87 = vector.extract_strided_slice %82 {offsets = [0, 2, 0], sizes = [18, 1, 16], strides = [1, 1, 1]} : vector<18x16x16xf32> to vector<18x1x16xf32>
    %88 = vector.shape_cast %87 : vector<18x1x16xf32> to vector<18x16xf32>
    %89 = vector.extract_strided_slice %82 {offsets = [0, 3, 0], sizes = [18, 1, 16], strides = [1, 1, 1]} : vector<18x16x16xf32> to vector<18x1x16xf32>
    %90 = vector.shape_cast %89 : vector<18x1x16xf32> to vector<18x16xf32>
    %91 = vector.extract_strided_slice %82 {offsets = [0, 4, 0], sizes = [18, 1, 16], strides = [1, 1, 1]} : vector<18x16x16xf32> to vector<18x1x16xf32>
    %92 = vector.shape_cast %91 : vector<18x1x16xf32> to vector<18x16xf32>
    %93 = vector.extract_strided_slice %82 {offsets = [0, 5, 0], sizes = [18, 1, 16], strides = [1, 1, 1]} : vector<18x16x16xf32> to vector<18x1x16xf32>
    %94 = vector.shape_cast %93 : vector<18x1x16xf32> to vector<18x16xf32>
    %95 = vector.extract_strided_slice %82 {offsets = [0, 6, 0], sizes = [18, 1, 16], strides = [1, 1, 1]} : vector<18x16x16xf32> to vector<18x1x16xf32>
    %96 = vector.shape_cast %95 : vector<18x1x16xf32> to vector<18x16xf32>
    %97 = vector.extract_strided_slice %82 {offsets = [0, 7, 0], sizes = [18, 1, 16], strides = [1, 1, 1]} : vector<18x16x16xf32> to vector<18x1x16xf32>
    %98 = vector.shape_cast %97 : vector<18x1x16xf32> to vector<18x16xf32>
    %99 = vector.extract_strided_slice %82 {offsets = [0, 8, 0], sizes = [18, 1, 16], strides = [1, 1, 1]} : vector<18x16x16xf32> to vector<18x1x16xf32>
    %100 = vector.shape_cast %99 : vector<18x1x16xf32> to vector<18x16xf32>
    %101 = vector.extract_strided_slice %82 {offsets = [0, 9, 0], sizes = [18, 1, 16], strides = [1, 1, 1]} : vector<18x16x16xf32> to vector<18x1x16xf32>
    %102 = vector.shape_cast %101 : vector<18x1x16xf32> to vector<18x16xf32>
    %103 = vector.extract_strided_slice %82 {offsets = [0, 10, 0], sizes = [18, 1, 16], strides = [1, 1, 1]} : vector<18x16x16xf32> to vector<18x1x16xf32>
    %104 = vector.shape_cast %103 : vector<18x1x16xf32> to vector<18x16xf32>
    %105 = vector.extract_strided_slice %82 {offsets = [0, 11, 0], sizes = [18, 1, 16], strides = [1, 1, 1]} : vector<18x16x16xf32> to vector<18x1x16xf32>
    %106 = vector.shape_cast %105 : vector<18x1x16xf32> to vector<18x16xf32>
    %107 = vector.extract_strided_slice %82 {offsets = [0, 12, 0], sizes = [18, 1, 16], strides = [1, 1, 1]} : vector<18x16x16xf32> to vector<18x1x16xf32>
    %108 = vector.shape_cast %107 : vector<18x1x16xf32> to vector<18x16xf32>
    %109 = vector.extract_strided_slice %82 {offsets = [0, 13, 0], sizes = [18, 1, 16], strides = [1, 1, 1]} : vector<18x16x16xf32> to vector<18x1x16xf32>
    %110 = vector.shape_cast %109 : vector<18x1x16xf32> to vector<18x16xf32>
    %111 = vector.extract_strided_slice %82 {offsets = [0, 14, 0], sizes = [18, 1, 16], strides = [1, 1, 1]} : vector<18x16x16xf32> to vector<18x1x16xf32>
    %112 = vector.shape_cast %111 : vector<18x1x16xf32> to vector<18x16xf32>
    %113 = vector.extract_strided_slice %82 {offsets = [0, 15, 0], sizes = [18, 1, 16], strides = [1, 1, 1]} : vector<18x16x16xf32> to vector<18x1x16xf32>
    %114 = vector.shape_cast %113 : vector<18x1x16xf32> to vector<18x16xf32>
    %115 = tpu.concatenate %84, %86, %88, %90, %92, %94, %96, %98, %100, %102, %104, %106, %108, %110, %112, %114 in 1 : vector<18x16xf32>, vector<18x16xf32>, vector<18x16xf32>, vector<18x16xf32>, vector<18x16xf32>, vector<18x16xf32>, vector<18x16xf32>, vector<18x16xf32>, vector<18x16xf32>, vector<18x16xf32>, vector<18x16xf32>, vector<18x16xf32>, vector<18x16xf32>, vector<18x16xf32>, vector<18x16xf32>, vector<18x16xf32> -> vector<18x256xf32>
    %116 = tpu.transpose %115, [1, 0] : vector<18x256xf32> -> vector<256x18xf32>
    %c0_i32_54 = arith.constant 0 : i32
    %117 = arith.addi %1, %c0_i32_54 : i32
    %c0_55 = arith.constant 0 : index
    %c2_56 = arith.constant 2 : index
    %118 = arith.index_cast %117 : i32 to index
    %c0_57 = arith.constant 0 : index
    %119 = vector.load %arg2[%c0_55, %c2_56, %118, %c0_57] : memref<1x4x18x18xf32, #tpu.memory_space<vmem>>, vector<1x1x16x16xf32>
    %120 = vector.shape_cast %119 : vector<1x1x16x16xf32> to vector<16x16xf32>
    %c0_58 = arith.constant 0 : index
    %c2_59 = arith.constant 2 : index
    %121 = arith.index_cast %117 : i32 to index
    %c1_60 = arith.constant 1 : index
    %122 = vector.load %arg2[%c0_58, %c2_59, %121, %c1_60] : memref<1x4x18x18xf32, #tpu.memory_space<vmem>>, vector<1x1x16x16xf32>
    %123 = vector.shape_cast %122 : vector<1x1x16x16xf32> to vector<16x16xf32>
    %c0_61 = arith.constant 0 : index
    %c2_62 = arith.constant 2 : index
    %124 = arith.index_cast %117 : i32 to index
    %c2_63 = arith.constant 2 : index
    %125 = vector.load %arg2[%c0_61, %c2_62, %124, %c2_63] : memref<1x4x18x18xf32, #tpu.memory_space<vmem>>, vector<1x1x16x16xf32>
    %126 = vector.shape_cast %125 : vector<1x1x16x16xf32> to vector<16x16xf32>
    %c1_i32_64 = arith.constant 1 : i32
    %127 = arith.addi %1, %c1_i32_64 : i32
    %c0_65 = arith.constant 0 : index
    %c2_66 = arith.constant 2 : index
    %128 = arith.index_cast %127 : i32 to index
    %c0_67 = arith.constant 0 : index
    %129 = vector.load %arg2[%c0_65, %c2_66, %128, %c0_67] : memref<1x4x18x18xf32, #tpu.memory_space<vmem>>, vector<1x1x16x16xf32>
    %130 = vector.shape_cast %129 : vector<1x1x16x16xf32> to vector<16x16xf32>
    %c0_68 = arith.constant 0 : index
    %c2_69 = arith.constant 2 : index
    %131 = arith.index_cast %127 : i32 to index
    %c1_70 = arith.constant 1 : index
    %132 = vector.load %arg2[%c0_68, %c2_69, %131, %c1_70] : memref<1x4x18x18xf32, #tpu.memory_space<vmem>>, vector<1x1x16x16xf32>
    %133 = vector.shape_cast %132 : vector<1x1x16x16xf32> to vector<16x16xf32>
    %c0_71 = arith.constant 0 : index
    %c2_72 = arith.constant 2 : index
    %134 = arith.index_cast %127 : i32 to index
    %c2_73 = arith.constant 2 : index
    %135 = vector.load %arg2[%c0_71, %c2_72, %134, %c2_73] : memref<1x4x18x18xf32, #tpu.memory_space<vmem>>, vector<1x1x16x16xf32>
    %136 = vector.shape_cast %135 : vector<1x1x16x16xf32> to vector<16x16xf32>
    %c2_i32_74 = arith.constant 2 : i32
    %137 = arith.addi %1, %c2_i32_74 : i32
    %c0_75 = arith.constant 0 : index
    %c2_76 = arith.constant 2 : index
    %138 = arith.index_cast %137 : i32 to index
    %c0_77 = arith.constant 0 : index
    %139 = vector.load %arg2[%c0_75, %c2_76, %138, %c0_77] : memref<1x4x18x18xf32, #tpu.memory_space<vmem>>, vector<1x1x16x16xf32>
    %140 = vector.shape_cast %139 : vector<1x1x16x16xf32> to vector<16x16xf32>
    %c0_78 = arith.constant 0 : index
    %c2_79 = arith.constant 2 : index
    %141 = arith.index_cast %137 : i32 to index
    %c1_80 = arith.constant 1 : index
    %142 = vector.load %arg2[%c0_78, %c2_79, %141, %c1_80] : memref<1x4x18x18xf32, #tpu.memory_space<vmem>>, vector<1x1x16x16xf32>
    %143 = vector.shape_cast %142 : vector<1x1x16x16xf32> to vector<16x16xf32>
    %c0_81 = arith.constant 0 : index
    %c2_82 = arith.constant 2 : index
    %144 = arith.index_cast %137 : i32 to index
    %c2_83 = arith.constant 2 : index
    %145 = vector.load %arg2[%c0_81, %c2_82, %144, %c2_83] : memref<1x4x18x18xf32, #tpu.memory_space<vmem>>, vector<1x1x16x16xf32>
    %146 = vector.shape_cast %145 : vector<1x1x16x16xf32> to vector<16x16xf32>
    %c0_i32_84 = arith.constant 0 : i32
    %147 = arith.addi %1, %c0_i32_84 : i32
    %c0_85 = arith.constant 0 : index
    %c3 = arith.constant 3 : index
    %148 = arith.index_cast %147 : i32 to index
    %c0_86 = arith.constant 0 : index
    %149 = vector.load %arg2[%c0_85, %c3, %148, %c0_86] : memref<1x4x18x18xf32, #tpu.memory_space<vmem>>, vector<1x1x16x16xf32>
    %150 = vector.shape_cast %149 : vector<1x1x16x16xf32> to vector<16x16xf32>
    %c0_87 = arith.constant 0 : index
    %c3_88 = arith.constant 3 : index
    %151 = arith.index_cast %147 : i32 to index
    %c1_89 = arith.constant 1 : index
    %152 = vector.load %arg2[%c0_87, %c3_88, %151, %c1_89] : memref<1x4x18x18xf32, #tpu.memory_space<vmem>>, vector<1x1x16x16xf32>
    %153 = vector.shape_cast %152 : vector<1x1x16x16xf32> to vector<16x16xf32>
    %c0_90 = arith.constant 0 : index
    %c3_91 = arith.constant 3 : index
    %154 = arith.index_cast %147 : i32 to index
    %c2_92 = arith.constant 2 : index
    %155 = vector.load %arg2[%c0_90, %c3_91, %154, %c2_92] : memref<1x4x18x18xf32, #tpu.memory_space<vmem>>, vector<1x1x16x16xf32>
    %156 = vector.shape_cast %155 : vector<1x1x16x16xf32> to vector<16x16xf32>
    %c1_i32_93 = arith.constant 1 : i32
    %157 = arith.addi %1, %c1_i32_93 : i32
    %c0_94 = arith.constant 0 : index
    %c3_95 = arith.constant 3 : index
    %158 = arith.index_cast %157 : i32 to index
    %c0_96 = arith.constant 0 : index
    %159 = vector.load %arg2[%c0_94, %c3_95, %158, %c0_96] : memref<1x4x18x18xf32, #tpu.memory_space<vmem>>, vector<1x1x16x16xf32>
    %160 = vector.shape_cast %159 : vector<1x1x16x16xf32> to vector<16x16xf32>
    %c0_97 = arith.constant 0 : index
    %c3_98 = arith.constant 3 : index
    %161 = arith.index_cast %157 : i32 to index
    %c1_99 = arith.constant 1 : index
    %162 = vector.load %arg2[%c0_97, %c3_98, %161, %c1_99] : memref<1x4x18x18xf32, #tpu.memory_space<vmem>>, vector<1x1x16x16xf32>
    %163 = vector.shape_cast %162 : vector<1x1x16x16xf32> to vector<16x16xf32>
    %c0_100 = arith.constant 0 : index
    %c3_101 = arith.constant 3 : index
    %164 = arith.index_cast %157 : i32 to index
    %c2_102 = arith.constant 2 : index
    %165 = vector.load %arg2[%c0_100, %c3_101, %164, %c2_102] : memref<1x4x18x18xf32, #tpu.memory_space<vmem>>, vector<1x1x16x16xf32>
    %166 = vector.shape_cast %165 : vector<1x1x16x16xf32> to vector<16x16xf32>
    %c2_i32_103 = arith.constant 2 : i32
    %167 = arith.addi %1, %c2_i32_103 : i32
    %c0_104 = arith.constant 0 : index
    %c3_105 = arith.constant 3 : index
    %168 = arith.index_cast %167 : i32 to index
    %c0_106 = arith.constant 0 : index
    %169 = vector.load %arg2[%c0_104, %c3_105, %168, %c0_106] : memref<1x4x18x18xf32, #tpu.memory_space<vmem>>, vector<1x1x16x16xf32>
    %170 = vector.shape_cast %169 : vector<1x1x16x16xf32> to vector<16x16xf32>
    %c0_107 = arith.constant 0 : index
    %c3_108 = arith.constant 3 : index
    %171 = arith.index_cast %167 : i32 to index
    %c1_109 = arith.constant 1 : index
    %172 = vector.load %arg2[%c0_107, %c3_108, %171, %c1_109] : memref<1x4x18x18xf32, #tpu.memory_space<vmem>>, vector<1x1x16x16xf32>
    %173 = vector.shape_cast %172 : vector<1x1x16x16xf32> to vector<16x16xf32>
    %c0_110 = arith.constant 0 : index
    %c3_111 = arith.constant 3 : index
    %174 = arith.index_cast %167 : i32 to index
    %c2_112 = arith.constant 2 : index
    %175 = vector.load %arg2[%c0_110, %c3_111, %174, %c2_112] : memref<1x4x18x18xf32, #tpu.memory_space<vmem>>, vector<1x1x16x16xf32>
    %176 = vector.shape_cast %175 : vector<1x1x16x16xf32> to vector<16x16xf32>
    %177 = vector.shape_cast %120 : vector<16x16xf32> to vector<1x16x16xf32>
    %178 = vector.shape_cast %123 : vector<16x16xf32> to vector<1x16x16xf32>
    %179 = vector.shape_cast %126 : vector<16x16xf32> to vector<1x16x16xf32>
    %180 = vector.shape_cast %130 : vector<16x16xf32> to vector<1x16x16xf32>
    %181 = vector.shape_cast %133 : vector<16x16xf32> to vector<1x16x16xf32>
    %182 = vector.shape_cast %136 : vector<16x16xf32> to vector<1x16x16xf32>
    %183 = vector.shape_cast %140 : vector<16x16xf32> to vector<1x16x16xf32>
    %184 = vector.shape_cast %143 : vector<16x16xf32> to vector<1x16x16xf32>
    %185 = vector.shape_cast %146 : vector<16x16xf32> to vector<1x16x16xf32>
    %186 = vector.shape_cast %150 : vector<16x16xf32> to vector<1x16x16xf32>
    %187 = vector.shape_cast %153 : vector<16x16xf32> to vector<1x16x16xf32>
    %188 = vector.shape_cast %156 : vector<16x16xf32> to vector<1x16x16xf32>
    %189 = vector.shape_cast %160 : vector<16x16xf32> to vector<1x16x16xf32>
    %190 = vector.shape_cast %163 : vector<16x16xf32> to vector<1x16x16xf32>
    %191 = vector.shape_cast %166 : vector<16x16xf32> to vector<1x16x16xf32>
    %192 = vector.shape_cast %170 : vector<16x16xf32> to vector<1x16x16xf32>
    %193 = vector.shape_cast %173 : vector<16x16xf32> to vector<1x16x16xf32>
    %194 = vector.shape_cast %176 : vector<16x16xf32> to vector<1x16x16xf32>
    %195 = tpu.concatenate %177, %178, %179, %180, %181, %182, %183, %184, %185, %186, %187, %188, %189, %190, %191, %192 in 0 : vector<1x16x16xf32>, vector<1x16x16xf32>, vector<1x16x16xf32>, vector<1x16x16xf32>, vector<1x16x16xf32>, vector<1x16x16xf32>, vector<1x16x16xf32>, vector<1x16x16xf32>, vector<1x16x16xf32>, vector<1x16x16xf32>, vector<1x16x16xf32>, vector<1x16x16xf32>, vector<1x16x16xf32>, vector<1x16x16xf32>, vector<1x16x16xf32>, vector<1x16x16xf32> -> vector<16x16x16xf32>
    %196 = tpu.concatenate %193, %194 in 0 : vector<1x16x16xf32>, vector<1x16x16xf32> -> vector<2x16x16xf32>
    %197 = tpu.concatenate %195, %196 in 0 : vector<16x16x16xf32>, vector<2x16x16xf32> -> vector<18x16x16xf32>
    %198 = vector.extract_strided_slice %197 {offsets = [0, 0, 0], sizes = [18, 1, 16], strides = [1, 1, 1]} : vector<18x16x16xf32> to vector<18x1x16xf32>
    %199 = vector.shape_cast %198 : vector<18x1x16xf32> to vector<18x16xf32>
    %200 = vector.extract_strided_slice %197 {offsets = [0, 1, 0], sizes = [18, 1, 16], strides = [1, 1, 1]} : vector<18x16x16xf32> to vector<18x1x16xf32>
    %201 = vector.shape_cast %200 : vector<18x1x16xf32> to vector<18x16xf32>
    %202 = vector.extract_strided_slice %197 {offsets = [0, 2, 0], sizes = [18, 1, 16], strides = [1, 1, 1]} : vector<18x16x16xf32> to vector<18x1x16xf32>
    %203 = vector.shape_cast %202 : vector<18x1x16xf32> to vector<18x16xf32>
    %204 = vector.extract_strided_slice %197 {offsets = [0, 3, 0], sizes = [18, 1, 16], strides = [1, 1, 1]} : vector<18x16x16xf32> to vector<18x1x16xf32>
    %205 = vector.shape_cast %204 : vector<18x1x16xf32> to vector<18x16xf32>
    %206 = vector.extract_strided_slice %197 {offsets = [0, 4, 0], sizes = [18, 1, 16], strides = [1, 1, 1]} : vector<18x16x16xf32> to vector<18x1x16xf32>
    %207 = vector.shape_cast %206 : vector<18x1x16xf32> to vector<18x16xf32>
    %208 = vector.extract_strided_slice %197 {offsets = [0, 5, 0], sizes = [18, 1, 16], strides = [1, 1, 1]} : vector<18x16x16xf32> to vector<18x1x16xf32>
    %209 = vector.shape_cast %208 : vector<18x1x16xf32> to vector<18x16xf32>
    %210 = vector.extract_strided_slice %197 {offsets = [0, 6, 0], sizes = [18, 1, 16], strides = [1, 1, 1]} : vector<18x16x16xf32> to vector<18x1x16xf32>
    %211 = vector.shape_cast %210 : vector<18x1x16xf32> to vector<18x16xf32>
    %212 = vector.extract_strided_slice %197 {offsets = [0, 7, 0], sizes = [18, 1, 16], strides = [1, 1, 1]} : vector<18x16x16xf32> to vector<18x1x16xf32>
    %213 = vector.shape_cast %212 : vector<18x1x16xf32> to vector<18x16xf32>
    %214 = vector.extract_strided_slice %197 {offsets = [0, 8, 0], sizes = [18, 1, 16], strides = [1, 1, 1]} : vector<18x16x16xf32> to vector<18x1x16xf32>
    %215 = vector.shape_cast %214 : vector<18x1x16xf32> to vector<18x16xf32>
    %216 = vector.extract_strided_slice %197 {offsets = [0, 9, 0], sizes = [18, 1, 16], strides = [1, 1, 1]} : vector<18x16x16xf32> to vector<18x1x16xf32>
    %217 = vector.shape_cast %216 : vector<18x1x16xf32> to vector<18x16xf32>
    %218 = vector.extract_strided_slice %197 {offsets = [0, 10, 0], sizes = [18, 1, 16], strides = [1, 1, 1]} : vector<18x16x16xf32> to vector<18x1x16xf32>
    %219 = vector.shape_cast %218 : vector<18x1x16xf32> to vector<18x16xf32>
    %220 = vector.extract_strided_slice %197 {offsets = [0, 11, 0], sizes = [18, 1, 16], strides = [1, 1, 1]} : vector<18x16x16xf32> to vector<18x1x16xf32>
    %221 = vector.shape_cast %220 : vector<18x1x16xf32> to vector<18x16xf32>
    %222 = vector.extract_strided_slice %197 {offsets = [0, 12, 0], sizes = [18, 1, 16], strides = [1, 1, 1]} : vector<18x16x16xf32> to vector<18x1x16xf32>
    %223 = vector.shape_cast %222 : vector<18x1x16xf32> to vector<18x16xf32>
    %224 = vector.extract_strided_slice %197 {offsets = [0, 13, 0], sizes = [18, 1, 16], strides = [1, 1, 1]} : vector<18x16x16xf32> to vector<18x1x16xf32>
    %225 = vector.shape_cast %224 : vector<18x1x16xf32> to vector<18x16xf32>
    %226 = vector.extract_strided_slice %197 {offsets = [0, 14, 0], sizes = [18, 1, 16], strides = [1, 1, 1]} : vector<18x16x16xf32> to vector<18x1x16xf32>
    %227 = vector.shape_cast %226 : vector<18x1x16xf32> to vector<18x16xf32>
    %228 = vector.extract_strided_slice %197 {offsets = [0, 15, 0], sizes = [18, 1, 16], strides = [1, 1, 1]} : vector<18x16x16xf32> to vector<18x1x16xf32>
    %229 = vector.shape_cast %228 : vector<18x1x16xf32> to vector<18x16xf32>
    %230 = tpu.concatenate %199, %201, %203, %205, %207, %209, %211, %213, %215, %217, %219, %221, %223, %225, %227, %229 in 1 : vector<18x16xf32>, vector<18x16xf32>, vector<18x16xf32>, vector<18x16xf32>, vector<18x16xf32>, vector<18x16xf32>, vector<18x16xf32>, vector<18x16xf32>, vector<18x16xf32>, vector<18x16xf32>, vector<18x16xf32>, vector<18x16xf32>, vector<18x16xf32>, vector<18x16xf32>, vector<18x16xf32>, vector<18x16xf32> -> vector<18x256xf32>
    %231 = tpu.transpose %230, [1, 0] : vector<18x256xf32> -> vector<256x18xf32>
    %232 = tpu.concatenate %116, %231 in 1 : vector<256x18xf32>, vector<256x18xf32> -> vector<256x36xf32>
    %c0_113 = arith.constant 0 : index
    %c0_114 = arith.constant 0 : index
    %233 = vector.load %arg3[%c0_113, %c0_114] : memref<256x36xf32, #tpu.memory_space<vmem>>, vector<256x36xf32>
    tpu.vector_store %arg3[%c0_113, %c0_114], %232 {strides = array<i32>} : memref<256x36xf32, #tpu.memory_space<vmem>>, vector<256x36xf32>,
    return
  }
  func.func @transform_0(%arg0: i32, %arg1: i32) -> (i32, i32, i32, i32) {
    %c0_i32 = arith.constant 0 : i32
    %c0_i32_0 = arith.constant 0 : i32
    %c0_i32_1 = arith.constant 0 : i32
    %c0_i32_2 = arith.constant 0 : i32
    return %arg0, %c0_i32, %c0_i32_0, %c0_i32_1 : i32, i32, i32, i32
  }
  func.func @transform_1(%arg0: i32, %arg1: i32) -> (i32, i32) {
    %c1_i32 = arith.constant 1 : i32
    %0 = arith.muli %arg0, %c1_i32 : i32
    %1 = arith.addi %0, %arg1 : i32
    %c0_i32 = arith.constant 0 : i32
    %c0_i32_0 = arith.constant 0 : i32
    return %1, %c0_i32 : i32, i32
  }
}

</mosaic_0001>

<bundles_post_ra>
// kernel: tpu_custom_call.1
= control target key start
LH: loop header
LB: loop body
LE: loop exit
PB: predicated region body
PF: predicated region fallthrough
CT: control target
= control target key end

     0   :  { %s2203_s6 = smov 0   ;;  %s2205_s7 = smov 0   ;;  %s4227_s0 = inlined_call_operand.vmem [shape: f32[2,4,18,18], index: 0, kind: input, shape index: {}]   ;;  %s4228_s1 = inlined_call_operand.vmem [shape: f32[512,36], index: 1, kind: output, shape index: {}]  }
   0x1   :  { %s2207_s8 = smov 0  }
   0x2 LB: > { %s23_s9 = sadd.s32 1, %s2177_s7  ;;  %p2078_p0 = scmp.ge.s32.totalorder %s2181_s8, 1  ;;  %s2181_s8 = sphi %s2207_s8, %s11_s8   ;;  %s2177_s7 = sphi %s2205_s7, %s4293_s7   ;;  %s2173_s6 = sphi %s2203_s6, %s4292_s6  }
   0x3   : > { %p25_p1 = scmp.ge.s32.totalorder %s23_s9, 2  ;;  %p101_p2 = scmp.lt.s32.totalorder %s2181_s8, 3 }
   0x5   : > { %s4295_s9 = smov (%p25_p1, %s23_s9), 0  ;;  %p102_p3 = pnand %p2078_p0, %p101_p2 }
   0x7   : > { %105 = sbr.rel (%p102_p3) target bundleno = 974 (0x3ce), region = 24 }
   0xc   : > { %p122_p4 = scmp.lt.s32.totalorder %s2173_s6, 1  ;;  %s2183_s15 = smov 126   ;;  %vm220_vm0 = vcmask 1041409   ;;  %vm223_vm1 = vcmask 1042434   ;;  %vm226_vm2 = vcmask 1043459   ;;  %vm229_vm3 = vcmask 1044484  }
   0xd   : > { %s2184_s16 = smov 127   ;;  %vm232_vm4 = vcmask 1045509   ;;  %vm235_vm5 = vcmask 1046534   ;;  %vm238_vm6 = vcmask 1047559   ;;  %s2185_s17 = smov 16   ;;  %vm850_vm7 = vcmask 130048  }
   0xe   : > { %s123_s10 = scalar_select %p122_p4, %s2173_s6, 1  ;;  %vm854_vm8 = vcmask 261120   ;;  %vm858_vm9 = vcmask 392192   ;;  %vm862_vm10 = vcmask 523264   ;;  %vm870_vm11 = vcmask 785408  }
   0xf   : > { %s2186_s18 = smov 32   ;;  %s2187_s19 = smov 48   ;;  %vm866_vm12 = vcmask 654336   ;;  %vm874_vm13 = vcmask 916480   ;;  %vm1905_vm14 = vcmask 146432   ;;  %vm1938_vm15 = vcmask 293888  }
  0x10   : > { %s2106_s11 = smul.u32 96, %s123_s10  ;;  %s2188_s20 = smov 64  }
  0x11   : > { %s2189_s21 = smov 80   ;;  %s2190_s22 = smov 96  }
  0x12   : > { %s2228_s14 = scalar_lea.vmem %s4227_s0, %s2106_s11  ;;  %s2191_s23 = smov 112  }
  0x13   : > { %v2231_v0 = vld [vmem:[%s2228_s14] sm:$0xff]  ;;  %v2238_v1 = vld [vmem:[%s2228_s14 + $0x8] sm:$0xff]  ;;  %v2276_v7 = vld [vmem:[%s2228_s14 + $0x18] sm:$0xff]  ;;  %s2192_s24 = smov 18   ;;  %s2080_s25 = sshll.u32 %s2173_s6, 5 }
  0x14   : > { %165 = vrot.lane.b32.xlu1 %v2231_v0, %s2183_s15  ;;  %161 = vrot.lane.b32.xlu0 %v2231_v0, %s2184_s16  ;;  %v2245_v2 = vld [vmem:[%s2228_s14 + $0x9] sm:$0xff]  ;;  %v2248_v3 = vld [vmem:[%s2228_s14 + $0x1] sm:$0xff]  ;;  %v571_v12 = vrot.slane %v2238_v1, 1  ;;  %v259_v15 = vrot.slane %v2231_v0, 1  ;;  %v298_v17 = vrot.slane %v2231_v0, 2  ;;  %v338_v21 = vrot.slane %v2231_v0, 3 }
  0x15   : > { %v2259_v4 = vld [vmem:[%s2228_s14 + $0xa] sm:$0xff]  ;;  %v2262_v5 = vld [vmem:[%s2228_s14 + $0x2] sm:$0xff]  ;;  %v2290_v9 = vld [vmem:[%s2228_s14 + $0x19] sm:$0xff]  ;;  %v575_v13 = vrot.slane %v2245_v2, 6  ;;  %v263_v16 = vrot.slane %v2248_v3, 6  ;;  %v302_v19 = vrot.slane %v2248_v3, 7 }
  0x16   : > { %v2273_v6 = vld [vmem:[%s2228_s14 + $0x20] sm:$0xff]  ;;  %v581_v14 = vrot.slane %v2259_v4, 3  ;;  %v269_v18 = vrot.slane %v2262_v5, 3  ;;  %v308_v20 = vrot.slane %v2262_v5, 4  ;;  %v348_v22 = vrot.slane %v2262_v5, 5  ;;  %p129_p5 = scmp.lt.s32.totalorder %s2080_s25, 63 }
  0x17   : > { %v2287_v8 = vld [vmem:[%s2228_s14 + $0x21] sm:$0xff]  ;;  %v378_v23 = vrot.slane %v2231_v0, 4  ;;  %v383_v24 = vrot.slane %v2248_v3, 1  ;;  %v388_v25 = vrot.slane %v2262_v5, 6  ;;  %v418_v26 = vrot.slane %v2231_v0, 5 }
  0x18   : > { %167 = vrot.lane.b32.xlu1 %v2238_v1, %s2183_s15  ;;  %163 = vrot.lane.b32.xlu0 %v2238_v1, %s2184_s16  ;;  %v2301_v10 = vld [vmem:[%s2228_s14 + $0x22] sm:$0xff]  ;;  %v2304_v11 = vld [vmem:[%s2228_s14 + $0x1a] sm:$0xff]  ;;  %v423_v27 = vrot.slane %v2248_v3, 2  ;;  %v428_v28 = vrot.slane %v2262_v5, 7  ;;  %v458_v29 = vrot.slane %v2231_v0, 6  ;;  %v463_v30 = vrot.slane %v2248_v3, 3 }
  0x19   : > { %v498_v31 = vrot.slane %v2231_v0, 7  ;;  %v313_v37 = vrot.slane %v2276_v7, 1  ;;  %v353_v38 = vrot.slane %v2276_v7, 2  ;;  %v393_v39 = vrot.slane %v2276_v7, 3  ;;  %s4297_s25 = smov (!%p129_p5, %s2080_s25), 63 }
  0x1a   : > { %v433_v42 = vrot.slane %v2276_v7, 4  ;;  %v473_v43 = vrot.slane %v2276_v7, 5  ;;  %s2081_s26 = sshll.u32 %s4297_s25, 3 }
  0x1b   : > { %s4088_s29 = scalar_lea.vmem %s4228_s1, %s2081_s26 }
  0x1c   : > { %173 = vrot.lane.b32.xlu1 %v2245_v2, %s2184_s16  ;;  %171 = vrot.lane.b32.xlu0 %v2248_v3, %s2184_s16 }
  0x20   : > { %177 = vrot.lane.b32.xlu1 %v2245_v2, %s2183_s15  ;;  %175 = vrot.lane.b32.xlu0 %v2248_v3, %s2183_s15 }
  0x24   : > { %183 = vrot.lane.b32.xlu1 %v2259_v4, %s2184_s16  ;;  %181 = vrot.lane.b32.xlu0 %v2262_v5, %s2184_s16 }
  0x28   : > { %187 = vrot.lane.b32.xlu1 %v2259_v4, %s2183_s15  ;;  %185 = vrot.lane.b32.xlu0 %v2262_v5, %s2183_s15 }
  0x2c   : > { %193 = vrot.lane.b32.xlu1 %v2273_v6, %s2184_s16  ;;  %191 = vrot.lane.b32.xlu0 %v2276_v7, %s2184_s16 }
  0x30   : > { %197 = vrot.lane.b32.xlu1 %v2273_v6, %s2183_s15  ;;  %195 = vrot.lane.b32.xlu0 %v2276_v7, %s2183_s15 }
  0x34   : > { %203 = vrot.lane.b32.xlu1 %v2287_v8, %s2184_s16  ;;  %201 = vrot.lane.b32.xlu0 %v2290_v9, %s2184_s16 }
  0x38   : > { %207 = vrot.lane.b32.xlu1 %v2287_v8, %s2183_s15  ;;  %205 = vrot.lane.b32.xlu0 %v2290_v9, %s2183_s15 }
  0x3c   : > { %213 = vrot.lane.b32.xlu1 %v2301_v10, %s2184_s16  ;;  %211 = vrot.lane.b32.xlu0 %v2304_v11, %s2184_s16 }
  0x86   : > { %v2332_v34 = vpop.permute.xlu1 %165  ;;  %v2334_v35 = vpop.permute.xlu0 %161 }
  0x87   : > { %4231 = vst [vmem:[#allocation2_spill] sm:$0xff] %v2332_v34  ;;  %v299_v62 = vrot.slane %v2334_v35, 1  ;;  %v339_v56 = vrot.slane %v2334_v35, 2  ;;  %v379_v57 = vrot.slane %v2334_v35, 3  ;;  %v261_v33 = vrot.slane %v2332_v34, 7 }
  0x88   : > { %v260_v54 = vsel %vm220_vm0, %v2334_v35, %v259_v15  ;;  %v419_v51 = vrot.slane %v2334_v35, 4  ;;  %v341_v63 = vrot.slane %v2332_v34, 1  ;;  %v381_v55 = vrot.slane %v2332_v34, 2 }
  0x89   : > { %v300_v59 = vsel %vm220_vm0, %v299_v62, %v298_v17  ;;  %v340_v46 = vsel %vm220_vm0, %v339_v56, %v338_v21  ;;  %v380_v50 = vsel %vm220_vm0, %v379_v57, %v378_v23  ;;  %v262_v62 = vsel %vm223_vm1, %v261_v33, %v260_v54 }
  0x8a   : > { %v2352_v52 = vpop.permute.xlu1 %167  ;;  %v2354_v53 = vpop.permute.xlu0 %163  ;;  %v421_v44 = vrot.slane %v2332_v34, 3  ;;  %v459_v15 = vrot.slane %v2334_v35, 5  ;;  %v301_v23 = vsel %vm223_vm1, %v2332_v34, %v300_v59  ;;  %v420_v56 = vsel %vm220_vm0, %v419_v51, %v418_v26 }
  0x8b   : > { %v573_v17 = vrot.slane %v2352_v52, 7  ;;  %v572_v21 = vsel %vm220_vm0, %v2354_v53, %v571_v12  ;;  %v342_v48 = vsel %vm223_vm1, %v341_v63, %v340_v46  ;;  %v382_v45 = vsel %vm223_vm1, %v381_v55, %v380_v50 }
  0x8c   : > { %v264_v59 = vsel %vm226_vm2, %v263_v16, %v262_v62  ;;  %v461_v26 = vrot.slane %v2332_v34, 4  ;;  %v303_v46 = vsel %vm226_vm2, %v302_v19, %v301_v23  ;;  %v422_v50 = vsel %vm223_vm1, %v421_v44, %v420_v56 }
  0x8d   : > { %v574_v58 = vsel %vm223_vm1, %v573_v17, %v572_v21  ;;  %v460_v55 = vsel %vm220_vm0, %v459_v15, %v458_v29  ;;  %v343_v63 = vsel %vm226_vm2, %v2248_v3, %v342_v48  ;;  %v384_v17 = vsel %vm226_vm2, %v383_v24, %v382_v45 }
  0x8e   : > { %v2372_v60 = vpop.permute.xlu1 %173  ;;  %v2374_v61 = vpop.permute.xlu0 %171  ;;  %v499_v23 = vrot.slane %v2334_v35, 6  ;;  %v576_v48 = vsel %vm226_vm2, %v575_v13, %v574_v58  ;;  %v424_v45 = vsel %vm226_vm2, %v423_v27, %v422_v50  ;;  %v462_v56 = vsel %vm223_vm1, %v461_v26, %v460_v55 }
  0x8f   : > { %v577_v16 = vrot.slane %v2372_v60, 5  ;;  %v425_v62 = vrot.slane %v2374_v61, 1  ;;  %v265_v44 = vrot.slane %v2374_v61, 5  ;;  %v304_v29 = vrot.slane %v2374_v61, 6 }
  0x90   : > { %v344_v15 = vrot.slane %v2374_v61, 7  ;;  %v501_v12 = vrot.slane %v2332_v34, 5  ;;  %v385_v13 = vsel %vm229_vm3, %v2374_v61, %v384_v17  ;;  %v465_v27 = vrot.slane %v2374_v61, 2 }
  0x91   : > { %v578_v32 = vsel %vm229_vm3, %v577_v16, %v576_v48  ;;  %v426_v58 = vsel %vm229_vm3, %v425_v62, %v424_v45  ;;  %v266_v55 = vsel %vm229_vm3, %v265_v44, %v264_v59  ;;  %v305_v40 = vsel %vm229_vm3, %v304_v29, %v303_v46 }
  0x92   : > { %v2395_v49 = vpop.permute.xlu1 %177  ;;  %v2397_v47 = vpop.permute.xlu0 %175  ;;  %v345_v36 = vsel %vm229_vm3, %v344_v15, %v343_v63  ;;  %v464_v16 = vsel %vm226_vm2, %v463_v30, %v462_v56  ;;  %v500_v48 = vsel %vm220_vm0, %v499_v23, %v498_v31 }
  0x93   : > { %v579_v24 = vrot.slane %v2395_v49, 4  ;;  %v267_v51 = vrot.slane %v2397_v47, 4  ;;  %v306_v41 = vrot.slane %v2397_v47, 5  ;;  %v346_v57 = vrot.slane %v2397_v47, 6 }
  0x94   : > { %v386_v62 = vrot.slane %v2397_v47, 7  ;;  %v427_v44 = vsel %vm232_vm4, %v2397_v47, %v426_v58  ;;  %v466_v0 = vsel %vm229_vm3, %v465_v27, %v464_v16 }
  0x95   : > { %v580_v17 = vsel %vm232_vm4, %v579_v24, %v578_v32  ;;  %v268_v59 = vsel %vm232_vm4, %v267_v51, %v266_v55  ;;  %v307_v46 = vsel %vm232_vm4, %v306_v41, %v305_v40  ;;  %v347_v63 = vsel %vm232_vm4, %v346_v57, %v345_v36 }
  0x96   : > { %v2427_v33 = vpop.permute.xlu1 %183  ;;  %v2429_v54 = vpop.permute.xlu0 %181  ;;  %v582_v40 = vsel %vm235_vm5, %v581_v14, %v580_v17  ;;  %v467_v57 = vrot.slane %v2397_v47, 1  ;;  %v270_v51 = vsel %vm235_vm5, %v269_v18, %v268_v59  ;;  %v309_v23 = vsel %vm235_vm5, %v308_v20, %v307_v46 }
  0x97   : > { %v583_v30 = vrot.slane %v2427_v33, 2  ;;  %v271_v32 = vrot.slane %v2429_v54, 2  ;;  %v310_v29 = vrot.slane %v2429_v54, 3  ;;  %v349_v24 = vsel %vm235_vm5, %v348_v22, %v347_v63 }
  0x98   : > { %v350_v14 = vrot.slane %v2429_v54, 4  ;;  %v387_v56 = vsel %vm232_vm4, %v386_v62, %v385_v13  ;;  %v390_v58 = vrot.slane %v2429_v54, 5  ;;  %v429_v27 = vsel %vm235_vm5, %v428_v28, %v427_v44 }
  0x99   : > { %v430_v18 = vrot.slane %v2429_v54, 6  ;;  %v2533_v55 = vsel %vm238_vm6, %v583_v30, %v582_v40  ;;  %v2536_v20 = vsel %vm238_vm6, %v271_v32, %v270_v51  ;;  %v2540_v16 = vsel %vm238_vm6, %v310_v29, %v309_v23 }
  0x9a   : > { %v2456_v21 = vpop.permute.xlu1 %187  ;;  %v2458_v19 = vpop.permute.xlu0 %185  ;;  %v468_v30 = vsel %vm232_vm4, %v467_v57, %v466_v0  ;;  %v470_v32 = vrot.slane %v2429_v54, 7 }
  0x9b   : > { %4232 = vst [vmem:[#allocation3_spill] sm:$0xff] %v2458_v19  ;;  %v273_v36 = vrot.slane %v2458_v19, 1  ;;  %v312_v41 = vrot.slane %v2458_v19, 2  ;;  %v352_v59 = vrot.slane %v2458_v19, 3  ;;  %v392_v46 = vrot.slane %v2458_v19, 4 }
  0x9c   : > { %v432_v63 = vrot.slane %v2458_v19, 5  ;;  %v472_v44 = vrot.slane %v2458_v19, 6 }
  0x9d   : > { %v274_v28 = vsel %vm220_vm0, %v2276_v7, %v273_v36  ;;  %v314_v62 = vsel %vm220_vm0, %v313_v37, %v312_v41  ;;  %v2560_v36 = vsel %vm238_vm6, %v350_v14, %v349_v24  ;;  %v389_v37 = vsel %vm235_vm5, %v388_v25, %v387_v56 }
  0x9e   : > { %v2481_v50 = vpop.permute.xlu1 %193  ;;  %v2483_v26 = vpop.permute.xlu0 %191  ;;  %v354_v24 = vsel %vm220_vm0, %v353_v38, %v352_v59  ;;  %v394_v25 = vsel %vm220_vm0, %v393_v39, %v392_v46  ;;  %v2581_v14 = vsel %vm238_vm6, %v430_v18, %v429_v27  ;;  %v469_v56 = vsel %vm235_vm5, %v2262_v5, %v468_v30 }
  0x9f   : > { %v275_v22 = vrot.slane %v2483_v26, 7  ;;  %v315_v51 = vsel %vm223_vm1, %v2483_v26, %v314_v62  ;;  %v355_v0 = vrot.slane %v2483_v26, 1  ;;  %v395_v57 = vrot.slane %v2483_v26, 2 }
  0xa0   : > { %v474_v38 = vsel %vm220_vm0, %v473_v43, %v472_v44  ;;  %v2595_v62 = vsel %vm238_vm6, %v470_v32, %v469_v56  ;;  %v435_v18 = vrot.slane %v2483_v26, 3  ;;  %v475_v46 = vrot.slane %v2483_v26, 4 }
  0xa1   : > { %v276_v41 = vsel %vm223_vm1, %v275_v22, %v274_v28  ;;  %v2586_v22 = vsel %vm238_vm6, %v390_v58, %v389_v37  ;;  %v434_v28 = vsel %vm220_vm0, %v433_v42, %v432_v63  ;;  %v502_v58 = vsel %vm223_vm1, %v501_v12, %v500_v48 }
  0xa2   : > { %v2506_v31 = vpop.permute.xlu1 %197  ;;  %v2508_v15 = vpop.permute.xlu0 %195  ;;  %v356_v59 = vsel %vm223_vm1, %v355_v0, %v354_v24  ;;  %v396_v42 = vsel %vm223_vm1, %v395_v57, %v394_v25  ;;  %v512_v43 = vrot.slane %v2458_v19, 7  ;;  %v4233_v48 = vrot.slane %v2290_v9, 5 }
  0xa3   : > { %v277_v29 = vrot.slane %v2508_v15, 6  ;;  %v316_v40 = vrot.slane %v2508_v15, 7  ;;  %v437_v12 = vrot.slane %v2508_v15, 2  ;;  %v436_v57 = vsel %vm223_vm1, %v435_v18, %v434_v28 }
  0xa4   : > { %v4235_v24 = vrot.slane %v2248_v3, 4  ;;  %v507_v56 = vrot.slane %v2397_v47, 2  ;;  %v515_v34 = vrot.slane %v2483_v26, 5  ;;  %v4236_v19 = vrot.slane %v2374_v61, 3 }
  0xa5   : > { %v278_v39 = vsel %vm226_vm2, %v277_v29, %v276_v41  ;;  %v317_v27 = vsel %vm226_vm2, %v316_v40, %v315_v51  ;;  %v397_v29 = vrot.slane %v2508_v15, 1  ;;  %v4234_v41 = vrot.slane %v2290_v9, 6 }
  0xa6   : > { %v2542_v13 = vpop.permute.xlu1 %203  ;;  %v2544_v17 = vpop.permute.xlu0 %201  ;;  %v280_v40 = vsel %vm229_vm3, %v4233_v48, %v278_v39  ;;  %v504_v25 = vsel %vm226_vm2, %v4235_v24, %v502_v58  ;;  %v357_v39 = vsel %vm226_vm2, %v2508_v15, %v356_v59  ;;  %v477_v48 = vrot.slane %v2508_v15, 3 }
  0xa7   : > { %v281_v30 = vrot.slane %v2544_v17, 4  ;;  %v320_v32 = vrot.slane %v2544_v17, 5  ;;  %v319_v51 = vsel %vm229_vm3, %v4234_v41, %v317_v27  ;;  %v506_v27 = vsel %vm229_vm3, %v4236_v19, %v504_v25 }
  0xa8   : > { %v4237_v41 = vrot.slane %v2276_v7, 6  ;;  %v398_v58 = vsel %vm226_vm2, %v397_v29, %v396_v42  ;;  %v476_v24 = vsel %vm223_vm1, %v475_v46, %v474_v38  ;;  %v360_v38 = vrot.slane %v2544_v17, 6 }
  0xa9   : > { %v282_v3 = vsel %vm232_vm4, %v281_v30, %v280_v40  ;;  %v321_v18 = vsel %vm232_vm4, %v320_v32, %v319_v51  ;;  %v517_v30 = vrot.slane %v2508_v15, 4  ;;  %v4238_v32 = vrot.slane %v2290_v9, 7 }
  0xaa   : > { %v2570_v23 = vpop.permute.xlu1 %207  ;;  %v2572_v45 = vpop.permute.xlu0 %205  ;;  %v514_v28 = vsel %vm220_vm0, %v4237_v41, %v512_v43  ;;  %v438_v43 = vsel %vm226_vm2, %v437_v12, %v436_v57  ;;  %v508_v46 = vsel %vm232_vm4, %v507_v56, %v506_v27  ;;  %v399_v29 = vsel %vm229_vm3, %v2290_v9, %v398_v58 }
  0xab   : > { %v283_v37 = vrot.slane %v2572_v45, 3  ;;  %v322_v0 = vrot.slane %v2572_v45, 4  ;;  %v359_v42 = vsel %vm229_vm3, %v4238_v32, %v357_v39  ;;  %v400_v40 = vrot.slane %v2544_v17, 7 }
  0xac   : > { %v478_v12 = vsel %vm226_vm2, %v477_v48, %v476_v24  ;;  %v402_v25 = vrot.slane %v2572_v45, 6  ;;  %v442_v39 = vrot.slane %v2572_v45, 7  ;;  %v481_v48 = vrot.slane %v2544_v17, 1 }
  0xad   : > { %v284_v19 = vsel %vm235_vm5, %v283_v37, %v282_v3  ;;  %v323_v59 = vsel %vm235_vm5, %v322_v0, %v321_v18  ;;  %v4239_v37 = vrot.slane %v2304_v11, 2  ;;  %v4240_v0 = vrot.slane %v2304_v11, 3 }
  0xae   : > { %v2607_v63 = vpop.permute.xlu1 %213  ;;  %v2609_v44 = vpop.permute.xlu0 %211  ;;  %v4242_v27 = vrot.slane %v2262_v5, 1  ;;  %v361_v3 = vsel %vm232_vm4, %v360_v38, %v359_v42  ;;  %v4243_v18 = vrot.slane %v2290_v9, 2  ;;  %v624_v24 = vrot.slane %v2456_v21, 2 }
  0xaf   : > { %217 = vrot.lane.b32.xlu1 %v2607_v63, %s2184_s16  ;;  %215 = vrot.lane.b32.xlu0 %v2609_v44, %s2184_s16  ;;  %v286_v51 = vsel %vm238_vm6, %v4239_v37, %v284_v19  ;;  %v325_v57 = vsel %vm238_vm6, %v4240_v0, %v323_v59  ;;  %v611_v19 = vrot.slane %v2354_v53, 1  ;;  %v521_v32 = vrot.slane %v2544_v17, 2 }
  0xb0   : > { %v510_v41 = vsel %vm235_vm5, %v4242_v27, %v508_v46  ;;  %v480_v58 = vsel %vm229_vm3, %v4243_v18, %v478_v12  ;;  %v4244_v42 = vrot.slane %v2290_v9, 3  ;;  %v523_v46 = vrot.slane %v2572_v45, 1 }
  0xb1   : > { %v589_v12 = vrot.slane %v2506_v31, 6  ;;  %v4245_v37 = vrot.slane %v2273_v6, 1  ;;  %v4249_v27 = vrot.slane %v2304_v11, 6 }
  0xb3   : > { %601 = vrot.lane.b32.xlu1 %v2533_v55, %s2185_s17  ;;  %289 = vrot.lane.b32.xlu0 %v2536_v20, %s2185_s17  ;;  %v516_v55 = vsel %vm223_vm1, %v515_v34, %v514_v28  ;;  %v362_v20 = vrot.slane %v2572_v45, 5  ;;  %v4241_v34 = vrot.slane %v2290_v9, 1  ;;  %v2708_v9 = vsel %vm238_vm6, %v2429_v54, %v510_v41 }
  0xb4   : > { %v518_v28 = vsel %vm226_vm2, %v517_v30, %v516_v55  ;;  %v585_v55 = vrot.slane %v2456_v21, 1 }
  0xb5   : > { %v440_v56 = vsel %vm229_vm3, %v4241_v34, %v438_v43  ;;  %v363_v59 = vsel %vm235_vm5, %v362_v20, %v361_v3  ;;  %v401_v43 = vsel %vm232_vm4, %v400_v40, %v399_v29  ;;  %v520_v38 = vsel %vm229_vm3, %v4244_v42, %v518_v28 }
  0xb6   : > { %v441_v5 = vsel %vm232_vm4, %v2544_v17, %v440_v56  ;;  %v403_v30 = vsel %vm235_vm5, %v402_v25, %v401_v43  ;;  %v482_v29 = vsel %vm232_vm4, %v481_v48, %v480_v58  ;;  %v587_v40 = vrot.slane %v2481_v50, 7 }
  0xb7   : > { %291 = vrot.lane.b32.xlu1 %v286_v51, %s2185_s17  ;;  %331 = vrot.lane.b32.xlu0 %v325_v57, %s2186_s18  ;;  %v443_v20 = vsel %vm235_vm5, %v442_v39, %v441_v5  ;;  %v628_v51 = vrot.slane %v2506_v31, 7  ;;  %v4247_v57 = vrot.slane %v2304_v11, 4  ;;  %v4248_v34 = vrot.slane %v2304_v11, 5 }
  0xb8   : > { %v522_v39 = vsel %vm232_vm4, %v521_v32, %v520_v38  ;;  %v651_v48 = vrot.slane %v2354_v53, 2  ;;  %v445_v41 = vsel %vm238_vm6, %v4249_v27, %v443_v20  ;;  %v483_v28 = vsel %vm235_vm5, %v2572_v45, %v482_v29 }
  0xb9   : > { %v365_v25 = vsel %vm238_vm6, %v4247_v57, %v363_v59  ;;  %v405_v56 = vsel %vm238_vm6, %v4248_v34, %v403_v30  ;;  %v524_v3 = vsel %vm235_vm5, %v523_v46, %v522_v39  ;;  %v586_v18 = vsel %vm220_vm0, %v2273_v6, %v585_v55 }
  0xba   : > { %v588_v58 = vsel %vm223_vm1, %v587_v40, %v586_v18  ;;  %v632_v32 = vrot.slane %v2542_v13, 5  ;;  %v653_v30 = vrot.slane %v2352_v52, 1  ;;  %v595_v42 = vrot.slane %v2570_v23, 3 }
  0xbb   : > { %329 = vrot.lane.b32.xlu1 %v2540_v16, %s2186_s18  ;;  %369 = vrot.lane.b32.xlu0 %v2560_v36, %s2187_s19  ;;  %v626_v16 = vsel %vm220_vm0, %v4245_v37, %v624_v24  ;;  %v4246_v36 = vrot.slane %v2238_v1, 2  ;;  %v593_v24 = vrot.slane %v2542_v13, 4  ;;  %v590_v43 = vsel %vm226_vm2, %v589_v12, %v588_v58 }
  0xbc   : > { %v634_v38 = vrot.slane %v2570_v23, 4  ;;  %v616_v46 = vrot.slane %v2372_v60, 6  ;;  %v4250_v55 = vrot.slane %v2238_v1, 3  ;;  %v4251_v29 = vrot.slane %v2304_v11, 7 }
  0xbd   : > { %v612_v0 = vsel %vm220_vm0, %v611_v19, %v4246_v36  ;;  %v627_v19 = vsel %vm223_vm1, %v2481_v50, %v626_v16  ;;  %v525_v12 = vsel %vm238_vm6, %v2304_v11, %v524_v3  ;;  %v4252_v37 = vrot.slane %v2245_v2, 7 }
  0xbe   : > { %v613_v59 = vsel %vm223_vm1, %v2352_v52, %v612_v0  ;;  %v629_v5 = vsel %vm226_vm2, %v628_v51, %v627_v19  ;;  %v652_v20 = vsel %vm220_vm0, %v651_v48, %v4250_v55  ;;  %v485_v40 = vsel %vm238_vm6, %v4251_v29, %v483_v28 }
  0xbf   : > { %371 = vrot.lane.b32.xlu1 %v365_v25, %s2187_s19  ;;  %411 = vrot.lane.b32.xlu0 %v405_v56, %s2188_s20  ;;  %v615_v16 = vsel %vm226_vm2, %v4252_v37, %v613_v59  ;;  %v618_v51 = vrot.slane %v2395_v49, 5  ;;  %v4253_v36 = vrot.slane %v2287_v8, 5  ;;  %v4254_v57 = vrot.slane %v2287_v8, 6 }
  0xc0   : > { %v664_v25 = vrot.slane %v2456_v21, 3  ;;  %v691_v34 = vrot.slane %v2354_v53, 3  ;;  %v654_v39 = vsel %vm223_vm1, %v653_v30, %v652_v20  ;;  %v617_v28 = vsel %vm229_vm3, %v616_v46, %v615_v16 }
  0xc1   : > { %v592_v0 = vsel %vm229_vm3, %v4253_v36, %v590_v43  ;;  %v631_v11 = vsel %vm229_vm3, %v4254_v57, %v629_v5  ;;  %v656_v3 = vrot.slane %v2372_v60, 7  ;;  %v619_v18 = vsel %vm232_vm4, %v618_v51, %v617_v28 }
  0xc2   : > { %v594_v56 = vsel %vm232_vm4, %v593_v24, %v592_v0  ;;  %v658_v58 = vrot.slane %v2395_v49, 6  ;;  %v704_v24 = vrot.slane %v2456_v21, 4  ;;  %v693_v19 = vrot.slane %v2352_v52, 2 }
  0xc3   : > { %409 = vrot.lane.b32.xlu1 %v2586_v22, %s2188_s20  ;;  %449 = vrot.lane.b32.xlu0 %v2581_v14, %s2189_s21  ;;  %v633_v22 = vsel %vm232_vm4, %v632_v32, %v631_v11  ;;  %v667_v14 = vrot.slane %v2481_v50, 1  ;;  %v596_v48 = vsel %vm235_vm5, %v595_v42, %v594_v56  ;;  %v655_v59 = vsel %vm226_vm2, %v2245_v2, %v654_v39 }
  0xc4   : > { %v635_v27 = vsel %vm235_vm5, %v634_v38, %v633_v22  ;;  %v4255_v43 = vrot.slane %v2273_v6, 2  ;;  %v707_v32 = vrot.slane %v2481_v50, 2  ;;  %v4256_v30 = vrot.slane %v2238_v1, 4 }
  0xc5   : > { %v622_v38 = vrot.slane %v2427_v33, 3  ;;  %v709_v46 = vrot.slane %v2506_v31, 1  ;;  %v731_v55 = vrot.slane %v2354_v53, 4  ;;  %v4257_v20 = vrot.slane %v2301_v10, 2 }
  0xc6   : > { %v666_v5 = vsel %vm220_vm0, %v4255_v43, %v664_v25  ;;  %v692_v42 = vsel %vm220_vm0, %v691_v34, %v4256_v30  ;;  %v4259_v16 = vrot.slane %v2259_v4, 4  ;;  %v662_v36 = vrot.slane %v2427_v33, 4 }
  0xc7   : > { %451 = vrot.lane.b32.xlu1 %v445_v41, %s2189_s21  ;;  %491 = vrot.lane.b32.xlu0 %v485_v40, %s2190_s22  ;;  %v668_v41 = vsel %vm223_vm1, %v667_v14, %v666_v5  ;;  %v598_v29 = vsel %vm238_vm6, %v4257_v20, %v596_v48  ;;  %v4258_v40 = vrot.slane %v2301_v10, 3  ;;  %v657_v0 = vsel %vm229_vm3, %v656_v3, %v655_v59 }
  0xc8   : > { %v621_v51 = vsel %vm235_vm5, %v4259_v16, %v619_v18  ;;  %v672_v57 = vrot.slane %v2542_v13, 6  ;;  %v4260_v11 = vrot.slane %v2273_v6, 3  ;;  %v694_v34 = vsel %vm223_vm1, %v693_v19, %v692_v42 }
  0xc9   : > { %v637_v37 = vsel %vm238_vm6, %v4258_v40, %v635_v27  ;;  %v659_v56 = vsel %vm232_vm4, %v658_v58, %v657_v0  ;;  %v669_v22 = vsel %vm226_vm2, %v2506_v31, %v668_v41  ;;  %v733_v14 = vrot.slane %v2352_v52, 3 }
  0xca   : > { %v706_v25 = vsel %vm220_vm0, %v4260_v11, %v704_v24  ;;  %v674_v48 = vrot.slane %v2570_v23, 5  ;;  %v712_v28 = vrot.slane %v2542_v13, 7  ;;  %v4262_v18 = vrot.slane %v2245_v2, 1 }
  0xcb   : > { %489 = vrot.lane.b32.xlu1 %v2595_v62, %s2190_s22  ;;  %529 = vrot.lane.b32.xlu0 %v2708_v9, %s2191_s23  ;;  %v708_v39 = vsel %vm223_vm1, %v707_v32, %v706_v25  ;;  %v4261_v62 = vrot.slane %v2238_v1, 5  ;;  %v714_v9 = vrot.slane %v2570_v23, 6  ;;  %v698_v24 = vrot.slane %v2395_v49, 7 }
  0xcc   : > { %v710_v27 = vsel %vm226_vm2, %v709_v46, %v708_v39  ;;  %v696_v58 = vsel %vm226_vm2, %v4262_v18, %v694_v34  ;;  %v744_v19 = vrot.slane %v2456_v21, 5  ;;  %v623_v59 = vsel %vm238_vm6, %v622_v38, %v621_v51 }
  0xcd   : > { %v732_v3 = vsel %vm220_vm0, %v731_v55, %v4261_v62  ;;  %v4263_v43 = vrot.slane %v2259_v4, 5  ;;  %v4264_v32 = vrot.slane %v2287_v8, 7  ;;  %v747_v42 = vrot.slane %v2481_v50, 3 }
  0xce   : > { %v711_v46 = vsel %vm229_vm3, %v2287_v8, %v710_v27  ;;  %v734_v38 = vsel %vm223_vm1, %v733_v14, %v732_v3  ;;  %v749_v55 = vrot.slane %v2506_v31, 2  ;;  %v697_v16 = vsel %vm229_vm3, %v2372_v60, %v696_v58 }
  0xcf   : > { %v661_v5 = vsel %vm235_vm5, %v4263_v43, %v659_v56  ;;  %v671_v30 = vsel %vm229_vm3, %v4264_v32, %v669_v22  ;;  %531 = vrot.lane.b32.xlu1 %v525_v12, %s2191_s23  ;;  %603 = vrot.lane.b32.xlu0 %v598_v29, %s2185_s17  ;;  %v713_v40 = vsel %vm232_vm4, %v712_v28, %v711_v46  ;;  %v771_v12 = vrot.slane %v2354_v53, 5 }
  0xd0   : > { %v673_v41 = vsel %vm232_vm4, %v672_v57, %v671_v30  ;;  %v715_v29 = vsel %vm235_vm5, %v714_v9, %v713_v40  ;;  %v699_v51 = vsel %vm232_vm4, %v698_v24, %v697_v16  ;;  %v737_v0 = vrot.slane %v2372_v60, 1 }
  0xd1   : > { %v675_v20 = vsel %vm235_vm5, %v674_v48, %v673_v41  ;;  %v4265_v57 = vrot.slane %v2273_v6, 4  ;;  %v4266_v25 = vrot.slane %v2245_v2, 2  ;;  %v784_v22 = vrot.slane %v2456_v21, 6 }
  0xd2   : > { %v811_v39 = vrot.slane %v2354_v53, 6  ;;  %v702_v14 = vrot.slane %v2427_v33, 5  ;;  %v787_v27 = vrot.slane %v2481_v50, 4  ;;  %v773_v28 = vrot.slane %v2352_v52, 4 }
  0xd3   : > { %v746_v11 = vsel %vm220_vm0, %v4265_v57, %v744_v19  ;;  %v736_v34 = vsel %vm226_vm2, %v4266_v25, %v734_v38  ;;  %643 = vrot.lane.b32.xlu1 %v637_v37, %s2186_s18  ;;  %641 = vrot.lane.b32.xlu0 %v623_v59, %s2186_s18  ;;  %v663_v62 = vsel %vm238_vm6, %v662_v36, %v661_v5  ;;  %v4267_v3 = vrot.slane %v2301_v10, 4 }
  0xd4   : > { %v748_v56 = vsel %vm223_vm1, %v747_v42, %v746_v11  ;;  %v789_v18 = vrot.slane %v2506_v31, 3  ;;  %v4268_v37 = vrot.slane %v2238_v1, 6  ;;  %v4269_v24 = vrot.slane %v2301_v10, 5 }
  0xd5   : > { %v750_v48 = vsel %vm226_vm2, %v749_v55, %v748_v56  ;;  %v677_v9 = vsel %vm238_vm6, %v4267_v3, %v675_v20  ;;  %v4270_v59 = vrot.slane %v2259_v4, 6  ;;  %v738_v36 = vsel %vm229_vm3, %v737_v0, %v736_v34 }
  0xd6   : > { %v772_v58 = vsel %vm220_vm0, %v771_v12, %v4268_v37  ;;  %v717_v19 = vsel %vm238_vm6, %v4269_v24, %v715_v29  ;;  %v813_v5 = vrot.slane %v2352_v52, 5  ;;  %v4271_v32 = vrot.slane %v2287_v8, 1 }
  0xd7   : > { %v701_v43 = vsel %vm235_vm5, %v4270_v59, %v699_v51  ;;  %v754_v42 = vrot.slane %v2570_v23, 7  ;;  %v4272_v41 = vrot.slane %v2273_v6, 5  ;;  %v4273_v38 = vrot.slane %v2238_v1, 7  ;;  %681 = vrot.lane.b32.xlu1 %v663_v62, %s2187_s19  ;;  %683 = vrot.lane.b32.xlu0 %v677_v9, %s2187_s19 }
  0xd8   : > { %v752_v30 = vsel %vm229_vm3, %v4271_v32, %v750_v48  ;;  %v703_v20 = vsel %vm238_vm6, %v702_v14, %v701_v43  ;;  %v742_v40 = vrot.slane %v2427_v33, 6  ;;  %v774_v12 = vsel %vm223_vm1, %v773_v28, %v772_v58 }
  0xd9   : > { %v786_v46 = vsel %vm220_vm0, %v4272_v41, %v784_v22  ;;  %v812_v55 = vsel %vm220_vm0, %v811_v39, %v4273_v38  ;;  %v739_v29 = vsel %vm232_vm4, %v2395_v49, %v738_v36  ;;  %v793_v1 = vrot.slane %v2542_v13, 1 }
  0xda   : > { %v788_v16 = vsel %vm223_vm1, %v787_v27, %v786_v46  ;;  %v824_v0 = vrot.slane %v2456_v21, 7  ;;  %v753_v57 = vsel %vm232_vm4, %v2542_v13, %v752_v30  ;;  %v777_v11 = vrot.slane %v2372_v60, 2 }
  0xdb   : > { %v790_v51 = vsel %vm226_vm2, %v789_v18, %v788_v16  ;;  %v814_v25 = vsel %vm223_vm1, %v813_v5, %v812_v55  ;;  %v827_v34 = vrot.slane %v2481_v50, 5  ;;  %v755_v56 = vsel %vm235_vm5, %v754_v42, %v753_v57  ;;  %723 = vrot.lane.b32.xlu1 %v717_v19, %s2188_s20  ;;  %721 = vrot.lane.b32.xlu0 %v703_v20, %s2188_s20 }
  0xdc   : > { %v4274_v22 = vrot.slane %v2245_v2, 3  ;;  %v779_v14 = vrot.slane %v2395_v49, 1  ;;  %v829_v48 = vrot.slane %v2506_v31, 4  ;;  %v4275_v27 = vrot.slane %v2259_v4, 7 }
  0xdd   : > { %v4276_v62 = vrot.slane %v2287_v8, 2  ;;  %v817_v9 = vrot.slane %v2372_v60, 3  ;;  %v831_v18 = vrot.slane %v2287_v8, 3  ;;  %v4277_v58 = vrot.slane %v2245_v2, 4 }
  0xde   : > { %v776_v39 = vsel %vm226_vm2, %v4274_v22, %v774_v12  ;;  %v741_v28 = vsel %vm235_vm5, %v4275_v27, %v739_v29  ;;  %v819_v19 = vrot.slane %v2395_v49, 2  ;;  %v4278_v59 = vrot.slane %v2273_v6, 6  ;;  %v2103_v22 = vld [vmem:[%s2228_s14 + $0x52] sm:$0xff]  ;;  %v3017_v27 = vld [vmem:[%s2228_s14 + $0x3a] sm:$0xff] }
  0xdf   : > { %v792_v3 = vsel %vm229_vm3, %v4276_v62, %v790_v51  ;;  %v816_v24 = vsel %vm226_vm2, %v4277_v58, %v814_v25  ;;  %v743_v36 = vsel %vm238_vm6, %v742_v40, %v741_v28  ;;  %v4279_v5 = vrot.slane %v2301_v10, 6  ;;  %v4281_v58 = vld [vmem:[#allocation3_spill] sm:$0xff] }
  0xe0   : > { %v794_v37 = vsel %vm232_vm4, %v793_v1, %v792_v3  ;;  %v826_v43 = vsel %vm220_vm0, %v4278_v59, %v824_v0  ;;  %v778_v8 = vsel %vm229_vm3, %v777_v11, %v776_v39  ;;  %v782_v42 = vrot.slane %v2427_v33, 7  ;;  %761 = vrot.lane.b32.xlu1 %v743_v36, %s2189_s21  ;;  %v2990_v39 = vld [vmem:[%s2228_s14 + $0x38] sm:$0xff] }
  0xe1   : > { %v757_v32 = vsel %vm238_vm6, %v4279_v5, %v755_v56  ;;  %v828_v30 = vsel %vm223_vm1, %v827_v34, %v826_v43  ;;  %v780_v2 = vsel %vm232_vm4, %v779_v14, %v778_v8  ;;  %v833_v6 = vrot.slane %v2542_v13, 2  ;;  %v2979_v34 = vld [vmem:[%s2228_s14 + $0x4a] sm:$0xff]  ;;  %v3003_v14 = vld [vmem:[%s2228_s14 + $0x39] sm:$0xff] }
  0xe2   : > { %v830_v41 = vsel %vm226_vm2, %v829_v48, %v828_v30  ;;  %763 = vrot.lane.b32.xlu0 %v757_v32, %s2189_s21  ;;  %v795_v46 = vsel %vm235_vm5, %v2570_v23, %v794_v37  ;;  %v818_v38 = vsel %vm229_vm3, %v817_v9, %v816_v24  ;;  %v821_v55 = vrot.slane %v2259_v4, 1  ;;  %v2982_v56 = vld [vmem:[%s2228_s14 + $0x30] sm:$0xff]  ;;  %v2142_v32 = vld [vmem:[%s2228_s14] sm:$0xff] }
  0xe3   : > { %v835_v20 = vrot.slane %v2570_v23, 1  ;;  %v820_v40 = vsel %vm232_vm4, %v819_v19, %v818_v38  ;;  %v781_v16 = vsel %vm235_vm5, %v2259_v4, %v780_v2  ;;  %v832_v12 = vsel %vm229_vm3, %v831_v18, %v830_v41  ;;  %v3014_v48 = vld [vmem:[%s2228_s14 + $0x32] sm:$0xff]  ;;  %v4282_v30 = vld [vmem:[#allocation2_spill] sm:$0xff] }
  0xe4   : > { %v4280_v29 = vrot.slane %v2301_v10, 7  ;;  %v783_v1 = vsel %vm238_vm6, %v782_v42, %v781_v16  ;;  %v834_v0 = vsel %vm232_vm4, %v833_v6, %v832_v12  ;;  %v822_v57 = vsel %vm235_vm5, %v821_v55, %v820_v40  ;;  %v2143_v40 = vld [vmem:[%s2228_s14 + $0x1] sm:$0xff]  ;;  %v2144_v12 = vld [vmem:[%s2228_s14 + $0x19] sm:$0xff] }
  0xe5   : > { %v836_v4 = vsel %vm235_vm5, %v835_v20, %v834_v0  ;;  %v823_v11 = vsel %vm238_vm6, %v2427_v33, %v822_v57  ;;  %v240_v28 = vrot.slane %v2276_v7, 7  ;;  %v599_v62 = vrot.slane %v2607_v63, 1 }
  0xe6   : > { %v797_v51 = vsel %vm238_vm6, %v4280_v29, %v795_v46  ;;  %801 = vrot.lane.b32.xlu0 %v783_v1, %s2190_s22  ;;  %v837_v25 = vsel %vm238_vm6, %v2301_v10, %v836_v4  ;;  %v3000_v10 = vld [vmem:[%s2228_s14 + $0x31] sm:$0xff]  ;;  %v287_v3 = vrot.slane %v2609_v44, 1  ;;  %v219_v37 = vrot.slane %v2334_v35, 7 }
  0xe7   : > { %803 = vrot.lane.b32.xlu1 %v797_v51, %s2190_s22  ;;  %v241_v24 = vsel %vm220_vm0, %v240_v28, %v4281_v58  ;;  %v242_v19 = vrot.slane %v2483_v26, 6  ;;  %v326_v35 = vrot.slane %v2609_v44, 2  ;;  %v366_v5 = vrot.slane %v2609_v44, 3 }
  0xe8   : > { %v221_v8 = vsel %vm220_vm0, %v219_v37, %v2142_v32  ;;  %v222_v2 = vrot.slane %v4282_v30, 6  ;;  %v244_v6 = vrot.slane %v2508_v15, 5  ;;  %v225_v16 = vrot.slane %v2143_v40, 5 }
  0xe9   : > { %v243_v41 = vsel %vm223_vm1, %v242_v19, %v241_v24  ;;  %v246_v29 = vrot.slane %v2144_v12, 4  ;;  %v406_v51 = vrot.slane %v2609_v44, 4  ;;  %v446_v15 = vrot.slane %v2609_v44, 5 }
  0xea   : > { %843 = vrot.lane.b32.xlu0 %v837_v25, %s2191_s23  ;;  %v224_v1 = vsel %vm223_vm1, %v222_v2, %v221_v8  ;;  %v245_v0 = vsel %vm226_vm2, %v244_v6, %v243_v41  ;;  %v248_v57 = vrot.slane %v2544_v17, 3  ;;  %v228_v37 = vrot.slane %v2374_v61, 4  ;;  %v2146_v2 = vld [vmem:[%s2228_s14 + $0x2] sm:$0xff] }
  0xeb   : > { %841 = vrot.lane.b32.xlu1 %v823_v11, %s2191_s23  ;;  %v250_v11 = vrot.slane %v2572_v45, 2  ;;  %v231_v17 = vrot.slane %v2397_v47, 3  ;;  %v247_v45 = vsel %vm229_vm3, %v246_v29, %v245_v0  ;;  %v486_v58 = vrot.slane %v2609_v44, 6 }
  0xec   : > { %v526_v24 = vrot.slane %v2609_v44, 7  ;;  %v227_v19 = vsel %vm226_vm2, %v225_v16, %v224_v1  ;;  %v234_v41 = vrot.slane %v2146_v2, 2  ;;  %v678_v6 = vrot.slane %v2607_v63, 3 }
  0xed   : > { %v230_v30 = vsel %vm229_vm3, %v228_v37, %v227_v19 }
  0xee   : > { %989 = vrot.lane.b32.xlu0 %v2982_v56, %s2184_s16 }
  0xef   : > { %1039 = vrot.lane.b32.xlu1 %v2979_v34, %s2184_s16 }
  0xf2   : > { %1041 = vrot.lane.b32.xlu0 %v2103_v22, %s2184_s16 }
  0xf3   : > { %991 = vrot.lane.b32.xlu1 %v2990_v39, %s2184_s16 }
  0xf6   : > { %993 = vrot.lane.b32.xlu0 %v2982_v56, %s2183_s15 }
  0xf7   : > { %995 = vrot.lane.b32.xlu1 %v2990_v39, %s2183_s15 }
  0xfa   : > { %999 = vrot.lane.b32.xlu0 %v3000_v10, %s2184_s16 }
  0xfb   : > { %1001 = vrot.lane.b32.xlu1 %v3003_v14, %s2184_s16 }
  0xfe   : > { %1003 = vrot.lane.b32.xlu0 %v3000_v10, %s2183_s15 }
  0xff   : > { %1005 = vrot.lane.b32.xlu1 %v3003_v14, %s2183_s15 }
 0x102   : > { %1009 = vrot.lane.b32.xlu0 %v3014_v48, %s2184_s16 }
 0x103   : > { %1011 = vrot.lane.b32.xlu1 %v3017_v27, %s2184_s16 }
 0x121   : > { %v3026_v9 = vpop.permute.xlu1 %217  ;;  %v3028_v18 = vpop.permute.xlu0 %215 }
 0x122   : > { %v600_v59 = vsel %vm220_vm0, %v3026_v9, %v599_v62  ;;  %v288_v7 = vsel %vm220_vm0, %v3028_v18, %v287_v3  ;;  %v327_v43 = vrot.slane %v3028_v18, 1  ;;  %v367_v36 = vrot.slane %v3028_v18, 2 }
 0x123   : > { %605 = vrot.lane.b32.xlu1 %v600_v59, %s2185_s17  ;;  %293 = vrot.lane.b32.xlu0 %v288_v7, %s2185_s17  ;;  %v407_v55 = vrot.slane %v3028_v18, 3  ;;  %v447_v20 = vrot.slane %v3028_v18, 4  ;;  %v487_v62 = vrot.slane %v3028_v18, 5  ;;  %v527_v3 = vrot.slane %v3028_v18, 6  ;;  %v2145_v7 = vld [vmem:[%s2228_s14 + $0x1a] sm:$0xff] }
 0x124   : > { %v328_v46 = vsel %vm220_vm0, %v327_v43, %v326_v35  ;;  %v368_v38 = vsel %vm220_vm0, %v367_v36, %v366_v5  ;;  %v249_v59 = vsel %vm232_vm4, %v248_v57, %v247_v45  ;;  %v252_v43 = vrot.slane %v2145_v7, 1  ;;  %v2147_v57 = vld [vmem:[%s2228_s14 + $0x20] sm:$0xff] }
 0x125   : > { %v3044_v26 = vpop.permute.xlu1 %601  ;;  %v3049_v42 = vpop.permute.xlu0 %289  ;;  %v408_v22 = vsel %vm220_vm0, %v407_v55, %v406_v51  ;;  %v448_v28 = vsel %vm220_vm0, %v447_v20, %v446_v15  ;;  %v679_v35 = vrot.slane %v3026_v9, 2  ;;  %v251_v5 = vsel %vm235_vm5, %v250_v11, %v249_v59 }
 0x126   : > { %v488_v47 = vsel %vm220_vm0, %v487_v62, %v486_v58  ;;  %v528_v32 = vsel %vm220_vm0, %v527_v3, %v526_v24  ;;  %v639_v8 = vrot.slane %v3026_v9, 1  ;;  %v638_v55 = vrot.slane %v2607_v63, 2 }
 0x127   : > { %333 = vrot.lane.b32.xlu1 %v328_v46, %s2186_s18  ;;  %373 = vrot.lane.b32.xlu0 %v368_v38, %s2187_s19  ;;  %v233_v46 = vsel %vm232_vm4, %v231_v17, %v230_v30  ;;  %v237_v38 = vrot.slane %v2429_v54, 1  ;;  %v253_v20 = vsel %vm238_vm6, %v252_v43, %v251_v5  ;;  %v680_v12 = vsel %vm220_vm0, %v679_v35, %v678_v6  ;;  %v2148_v43 = vld [vmem:[%s2228_s14 + $0x8] sm:$0xff] }
 0x128   : > { %v640_v51 = vsel %vm220_vm0, %v639_v8, %v638_v55  ;;  %v759_v15 = vrot.slane %v3026_v9, 4  ;;  %v719_v1 = vrot.slane %v3026_v9, 3  ;;  %v538_v54 = vrot.slane %v2354_v53, 7  ;;  %v2149_v30 = vld [vmem:[%s2228_s14 + $0x9] sm:$0xff]  ;;  %v2150_v6 = vld [vmem:[%s2228_s14 + $0x21] sm:$0xff] }
 0x129   : > { %v292_v4 = vpop.permute.xlu1 %291  ;;  %v332_v25 = vpop.permute.xlu0 %331  ;;  %v236_v0 = vsel %vm235_vm5, %v234_v41, %v233_v46  ;;  %v552_v11 = vrot.slane %v2147_v57, 7  ;;  %v799_v17 = vrot.slane %v3026_v9, 5  ;;  %v798_v59 = vrot.slane %v2607_v63, 6  ;;  %v3140_v55 = vld [vmem:[%s2228_s14 + $0x50] sm:$0xff]  ;;  %v2151_v57 = vld [vmem:[%s2228_s14 + $0x22] sm:$0xff] }
 0x12a   : > { %v852_v29 = vsel %vm850_vm7, %v253_v20, %v292_v4  ;;  %v758_v4 = vrot.slane %v2607_v63, 5  ;;  %v556_v7 = vrot.slane %v2506_v31, 5  ;;  %v542_v2 = vrot.slane %v2149_v30, 5 }
 0x12b   : > { %413 = vrot.lane.b32.xlu1 %v408_v22, %s2188_s20  ;;  %453 = vrot.lane.b32.xlu0 %v448_v28, %s2189_s21  ;;  %v239_v22 = vsel %vm238_vm6, %v237_v38, %v236_v0  ;;  %v718_v28 = vrot.slane %v2607_v63, 4  ;;  %v856_v53 = vsel %vm854_vm8, %v852_v29, %v332_v25  ;;  %v540_v25 = vrot.slane %v2352_v52, 6 }
 0x12c   : > { %v851_v62 = vsel %vm850_vm7, %v239_v22, %v3049_v42  ;;  %v760_v24 = vsel %vm220_vm0, %v759_v15, %v758_v4  ;;  %v554_v42 = vrot.slane %v2481_v50, 6  ;;  %v800_v8 = vsel %vm220_vm0, %v799_v17, %v798_v59 }
 0x12d   : > { %v330_v61 = vpop.permute.xlu1 %329  ;;  %v370_v36 = vpop.permute.xlu0 %369  ;;  %v720_v19 = vsel %vm220_vm0, %v719_v1, %v718_v28  ;;  %v553_v31 = vsel %vm220_vm0, %v552_v11, %v2456_v21  ;;  %v558_v46 = vrot.slane %v2150_v6, 4  ;;  %v560_v21 = vrot.slane %v2542_v13, 3 }
 0x12e   : > { %v855_v45 = vsel %vm854_vm8, %v851_v62, %v330_v61  ;;  %v539_v61 = vsel %vm220_vm0, %v538_v54, %v2148_v43  ;;  %v562_v29 = vrot.slane %v2570_v23, 2  ;;  %v839_v1 = vrot.slane %v3026_v9, 6 }
 0x12f   : > { %493 = vrot.lane.b32.xlu1 %v488_v47, %s2190_s22  ;;  %533 = vrot.lane.b32.xlu0 %v528_v32, %s2191_s23  ;;  %v859_v35 = vsel %vm858_vm9, %v855_v45, %v370_v36  ;;  %v555_v36 = vsel %vm223_vm1, %v554_v42, %v553_v31  ;;  %v541_v38 = vsel %vm223_vm1, %v540_v25, %v539_v61  ;;  %v546_v54 = vrot.slane %v2395_v49, 3  ;;  %v3163_v49 = vld [vmem:[%s2228_s14 + $0x48] sm:$0xff] }
 0x130   : > { %v557_v20 = vsel %vm226_vm2, %v556_v7, %v555_v36  ;;  %v543_v13 = vsel %vm226_vm2, %v542_v2, %v541_v38  ;;  %v564_v11 = vrot.slane %v2151_v57, 1  ;;  %v838_v22 = vrot.slane %v2607_v63, 7 }
 0x131   : > { %v372_v40 = vpop.permute.xlu1 %371  ;;  %v412_v16 = vpop.permute.xlu0 %411  ;;  %v559_v0 = vsel %vm229_vm3, %v558_v46, %v557_v20 }
 0x132   : > { %v860_v58 = vsel %vm858_vm9, %v856_v53, %v372_v40  ;;  %v2152_v53 = vld [vmem:[%s2228_s14 + $0xa] sm:$0xff]  ;;  %v840_v17 = vsel %vm220_vm0, %v839_v1, %v838_v22  ;;  %v1129_v22 = vrot.slane %v3014_v48, 4 }
 0x133   : > { %685 = vrot.lane.b32.xlu1 %v680_v12, %s2187_s19  ;;  %645 = vrot.lane.b32.xlu0 %v640_v51, %s2186_s18  ;;  %v864_v5 = vsel %vm862_vm10, %v860_v58, %v412_v16  ;;  %v544_v51 = vrot.slane %v2372_v60, 4  ;;  %v561_v60 = vsel %vm232_vm4, %v560_v21, %v559_v0  ;;  %v550_v58 = vrot.slane %v2427_v33, 1 }
 0x134   : > { %v563_v28 = vsel %vm235_vm5, %v562_v29, %v561_v60  ;;  %v1090_v0 = vrot.slane %v3014_v48, 3  ;;  %v1119_v60 = vrot.slane %v2982_v56, 2 }
 0x135   : > { %v410_v3 = vpop.permute.xlu1 %409  ;;  %v450_v37 = vpop.permute.xlu0 %449 }
 0x136   : > { %v863_v32 = vsel %vm862_vm10, %v859_v35, %v410_v3  ;;  %v548_v3 = vrot.slane %v2152_v53, 2  ;;  %v3189_v35 = vld [vmem:[%s2228_s14 + $0x49] sm:$0xff]  ;;  %v1169_v53 = vrot.slane %v3014_v48, 5 }
 0x137   : > { %765 = vrot.lane.b32.xlu1 %v760_v24, %s2189_s21  ;;  %725 = vrot.lane.b32.xlu0 %v720_v19, %s2188_s20  ;;  %v867_v40 = vsel %vm866_vm12, %v863_v32, %v450_v37  ;;  %v545_v37 = vsel %vm229_vm3, %v544_v51, %v543_v13  ;;  %v565_v19 = vsel %vm238_vm6, %v564_v11, %v563_v28  ;;  %v1084_v13 = vrot.slane %v3000_v10, 6 }
 0x138   : > { %v547_v24 = vsel %vm232_vm4, %v546_v54, %v545_v37  ;;  %v1080_v54 = vrot.slane %v2982_v56, 1  ;;  %v1123_v11 = vrot.slane %v3000_v10, 7 }
 0x139   : > { %v452_v47 = vpop.permute.xlu1 %451  ;;  %v492_v50 = vpop.permute.xlu0 %491  ;;  %v549_v7 = vsel %vm235_vm5, %v548_v3, %v547_v24  ;;  %v1199_v3 = vrot.slane %v2982_v56, 4  ;;  %v1239_v24 = vrot.slane %v2982_v56, 5 }
 0x13a   : > { %v868_v52 = vsel %vm866_vm12, %v864_v5, %v452_v47  ;;  %v551_v61 = vsel %vm238_vm6, %v550_v58, %v549_v7  ;;  %v3192_v5 = vld [vmem:[%s2228_s14 + $0x51] sm:$0xff]  ;;  %v1319_v7 = vrot.slane %v2982_v56, 7 }
 0x13b   : > { %v872_v41 = vsel %vm870_vm11, %v868_v52, %v492_v50  ;;  %1015 = vrot.lane.b32.xlu1 %v3017_v27, %s2183_s15  ;;  %805 = vrot.lane.b32.xlu0 %v800_v8, %s2190_s22  ;;  %v878_v33 = vsel %vm850_vm7, %v551_v61, %v3044_v26 }
 0x13d   : > { %v490_v16 = vpop.permute.xlu1 %489  ;;  %v530_v12 = vpop.permute.xlu0 %529 }
 0x13e   : > { %v871_v15 = vsel %vm870_vm11, %v867_v40, %v490_v16 }
 0x13f   : > { %1021 = vrot.lane.b32.xlu1 %v3140_v55, %s2184_s16  ;;  %1013 = vrot.lane.b32.xlu0 %v3014_v48, %s2183_s15  ;;  %v3157_v23 = vsel %vm874_vm13, %v871_v15, %v530_v12 }
 0x141   : > { %v532_v4 = vpop.permute.xlu1 %531  ;;  %v604_v62 = vpop.permute.xlu0 %603 }
 0x142   : > { %v3170_v45 = vsel %vm874_vm13, %v872_v41, %v532_v4  ;;  %v879_v42 = vsel %vm850_vm7, %v565_v19, %v604_v62  ;;  %v1159_v4 = vrot.slane %v2982_v56, 3  ;;  %v1279_v19 = vrot.slane %v2982_v56, 6 }
 0x143   : > { %845 = vrot.lane.b32.xlu1 %v840_v17, %s2191_s23  ;;  %1019 = vrot.lane.b32.xlu0 %v3163_v49, %s2184_s16 }
 0x145   : > { %v644_v25 = vpop.permute.xlu1 %643  ;;  %v642_v59 = vpop.permute.xlu0 %641 }
 0x146   : > { %v882_v43 = vsel %vm854_vm8, %v879_v42, %v644_v25  ;;  %v881_v47 = vsel %vm854_vm8, %v878_v33, %v642_v59  ;;  %v1204_v42 = vrot.slane %v3000_v10, 1  ;;  %v1209_v25 = vrot.slane %v3014_v48, 6 }
 0x147   : > { %1023 = vrot.lane.b32.xlu0 %v3163_v49, %s2183_s15  ;;  %1025 = vrot.lane.b32.xlu1 %v3140_v55, %s2183_s15  ;;  %v1244_v59 = vrot.slane %v3000_v10, 2  ;;  %v1051_v33 = vrot.slane %v3000_v10, 5 }
 0x149   : > { %v682_v50 = vpop.permute.xlu1 %681  ;;  %v684_v32 = vpop.permute.xlu0 %683 }
 0x14a   : > { %v884_v52 = vsel %vm858_vm9, %v881_v47, %v682_v50  ;;  %v885_v8 = vsel %vm858_vm9, %v882_v43, %v684_v32  ;;  %v1284_v47 = vrot.slane %v3000_v10, 3 }
 0x14b   : > { %1029 = vrot.lane.b32.xlu0 %v3189_v35, %s2184_s16  ;;  %1031 = vrot.lane.b32.xlu1 %v3192_v5, %s2184_s16 }
 0x14d   : > { %v724_v31 = vpop.permute.xlu1 %723  ;;  %v722_v26 = vpop.permute.xlu0 %721 }
 0x14e   : > { %v888_v30 = vsel %vm862_vm10, %v885_v8, %v724_v31  ;;  %v887_v2 = vsel %vm862_vm10, %v884_v52, %v722_v26 }
 0x14f   : > { %1033 = vrot.lane.b32.xlu0 %v3189_v35, %s2183_s15  ;;  %1035 = vrot.lane.b32.xlu1 %v3192_v5, %s2183_s15 }
 0x152   : > { %v762_v41 = vpop.permute.xlu1 %761 }
 0x153   : > { %v890_v6 = vsel %vm866_vm12, %v887_v2, %v762_v41  ;;  %v1057_v41 = vrot.slane %v3014_v48, 2 }
 0x154   : > { %v764_v36 = vpop.permute.xlu0 %763 }
 0x155   : > { %v891_v46 = vsel %vm866_vm12, %v888_v30, %v764_v36  ;;  %v1249_v30 = vrot.slane %v3014_v48, 7 }
 0x158   : > { %v802_v20 = vpop.permute.xlu0 %801 }
 0x159   : > { %v804_v38 = vpop.permute.xlu1 %803  ;;  %v893_v40 = vsel %vm870_vm11, %v890_v6, %v802_v20 }
 0x15a   : > { %v894_v21 = vsel %vm870_vm11, %v891_v46, %v804_v38 }
 0x15c   : > { %v844_v12 = vpop.permute.xlu0 %843 }
 0x15d   : > { %v842_v16 = vpop.permute.xlu1 %841  ;;  %v3215_v51 = vsel %vm874_vm13, %v894_v21, %v844_v12 }
 0x15e   : > { %v3212_v29 = vsel %vm874_vm13, %v893_v40, %v842_v16  ;;  %4283 = vst [vmem:[#allocation3_spill] sm:$0xff] %v3215_v51 }
 0x160   : > { %v3219_v1 = vpop.permute.xlu0 %989 }
 0x161   : > { %v3217_v15 = vpop.permute.xlu1 %1039  ;;  %v1120_v57 = vrot.slane %v3219_v1, 1  ;;  %v1200_v28 = vrot.slane %v3219_v1, 3  ;;  %v1160_v62 = vrot.slane %v3219_v1, 2  ;;  %v1047_v37 = vrot.slane %v3219_v1, 7 }
 0x162   : > { %1043 = vrot.lane.b32.xlu0 %v3217_v15, %s2184_s16  ;;  %v1240_v17 = vrot.slane %v3219_v1, 4  ;;  %v1280_v43 = vrot.slane %v3219_v1, 5  ;;  %v1320_v50 = vrot.slane %v3219_v1, 6  ;;  %v1081_v32 = vsel %vm220_vm0, %v3219_v1, %v1080_v54 }
 0x163   : > { %v1121_v61 = vsel %vm220_vm0, %v1120_v57, %v1119_v60  ;;  %v1161_v52 = vsel %vm220_vm0, %v1160_v62, %v1159_v4  ;;  %v1201_v8 = vsel %vm220_vm0, %v1200_v28, %v1199_v3  ;;  %v1048_v2 = vsel %vm220_vm0, %v1047_v37, %v2982_v56 }
 0x164   : > { %v3237_v58 = vpop.permute.xlu0 %1041  ;;  %v1241_v26 = vsel %vm220_vm0, %v1240_v17, %v1239_v24  ;;  %v1281_v16 = vsel %vm220_vm0, %v1280_v43, %v1279_v19 }
 0x165   : > { %1045 = vrot.lane.b32.xlu1 %v3237_v58, %s2184_s16 }
 0x168   : > { %v3256_v31 = vpop.permute.xlu0 %993 }
 0x169   : > { %v1082_v36 = vrot.slane %v3256_v31, 7  ;;  %v1122_v6 = vsel %vm223_vm1, %v3256_v31, %v1121_v61  ;;  %v1162_v46 = vrot.slane %v3256_v31, 1  ;;  %v1202_v38 = vrot.slane %v3256_v31, 2 }
 0x16a   : > { %v1124_v20 = vsel %vm226_vm2, %v1123_v11, %v1122_v6  ;;  %v1242_v21 = vrot.slane %v3256_v31, 3  ;;  %v1049_v40 = vrot.slane %v3256_v31, 6  ;;  %v1282_v57 = vrot.slane %v3256_v31, 4 }
 0x16b   : > { %v1083_v12 = vsel %vm223_vm1, %v1082_v36, %v1081_v32  ;;  %v1163_v54 = vsel %vm223_vm1, %v1162_v46, %v1161_v52  ;;  %v1203_v60 = vsel %vm223_vm1, %v1202_v38, %v1201_v8 }
 0x16c   : > { %v3276_v4 = vpop.permute.xlu0 %999  ;;  %v1085_v28 = vsel %vm226_vm2, %v1084_v13, %v1083_v12  ;;  %v1164_v11 = vsel %vm226_vm2, %v3000_v10, %v1163_v54  ;;  %v1205_v62 = vsel %vm226_vm2, %v1204_v42, %v1203_v60  ;;  %v1243_v3 = vsel %vm223_vm1, %v1242_v21, %v1241_v26 }
 0x16d   : > { %v1086_v37 = vrot.slane %v3276_v4, 5  ;;  %v1125_v17 = vrot.slane %v3276_v4, 6  ;;  %v1165_v24 = vrot.slane %v3276_v4, 7  ;;  %v1206_v19 = vsel %vm229_vm3, %v3276_v4, %v1205_v62 }
 0x16e   : > { %v1245_v43 = vsel %vm226_vm2, %v1244_v59, %v1243_v3  ;;  %v1246_v13 = vrot.slane %v3276_v4, 1  ;;  %v1050_v61 = vsel %vm223_vm1, %v1049_v40, %v1048_v2  ;;  %v1053_v32 = vrot.slane %v3276_v4, 4 }
 0x16f   : > { %v1087_v42 = vsel %vm229_vm3, %v1086_v37, %v1085_v28  ;;  %v1126_v52 = vsel %vm229_vm3, %v1125_v17, %v1124_v20  ;;  %v1166_v8 = vsel %vm229_vm3, %v1165_v24, %v1164_v11  ;;  %v1052_v26 = vsel %vm226_vm2, %v1051_v33, %v1050_v61  ;;  %v3309_v37 = vpop.permute.xlu1 %991 }
 0x170   : > { %v1004_v36 = vpop.permute.xlu0 %1003  ;;  %v1247_v6 = vsel %vm229_vm3, %v1246_v13, %v1245_v43  ;;  %v1054_v46 = vsel %vm229_vm3, %v1053_v32, %v1052_v26  ;;  %v1283_v59 = vsel %vm223_vm1, %v1282_v57, %v1281_v16  ;;  %v1286_v38 = vrot.slane %v3276_v4, 2 }
 0x171   : > { %v1088_v2 = vrot.slane %v1004_v36, 4  ;;  %v1127_v21 = vrot.slane %v1004_v36, 5  ;;  %v1167_v40 = vrot.slane %v1004_v36, 6  ;;  %v1207_v12 = vrot.slane %v1004_v36, 7 }
 0x172   : > { %v1248_v54 = vsel %vm232_vm4, %v1004_v36, %v1247_v6  ;;  %v1055_v20 = vrot.slane %v1004_v36, 3  ;;  %v1285_v60 = vsel %vm226_vm2, %v1284_v47, %v1283_v59  ;;  %v1288_v28 = vrot.slane %v1004_v36, 1 }
 0x173   : > { %v1089_v33 = vsel %vm232_vm4, %v1088_v2, %v1087_v42  ;;  %v1128_v11 = vsel %vm232_vm4, %v1127_v21, %v1126_v52  ;;  %v1168_v62 = vsel %vm232_vm4, %v1167_v40, %v1166_v8  ;;  %v1208_v16 = vsel %vm232_vm4, %v1207_v12, %v1206_v19  ;;  %v3344_v21 = vpop.permute.xlu1 %995 }
 0x174   : > { %v1010_v57 = vpop.permute.xlu0 %1009  ;;  %v1091_v3 = vsel %vm235_vm5, %v1090_v0, %v1089_v33  ;;  %v1130_v47 = vsel %vm235_vm5, %v1129_v22, %v1128_v11  ;;  %v1170_v17 = vsel %vm235_vm5, %v1169_v53, %v1168_v62  ;;  %v1210_v24 = vsel %vm235_vm5, %v1209_v25, %v1208_v16 }
 0x175   : > { %v1092_v19 = vrot.slane %v1010_v57, 2  ;;  %v1131_v43 = vrot.slane %v1010_v57, 3  ;;  %v1171_v13 = vrot.slane %v1010_v57, 4  ;;  %v1211_v61 = vrot.slane %v1010_v57, 5 }
 0x176   : > { %v1250_v0 = vsel %vm235_vm5, %v1249_v30, %v1248_v54  ;;  %v1251_v32 = vrot.slane %v1010_v57, 6  ;;  %v1056_v42 = vsel %vm232_vm4, %v1055_v20, %v1054_v46  ;;  %v1059_v52 = vrot.slane %v1010_v57, 1 }
 0x177   : > { %v1093_v22 = vsel %vm238_vm6, %v1092_v19, %v1091_v3  ;;  %v3324_v8 = vsel %vm238_vm6, %v1131_v43, %v1130_v47  ;;  %v3327_v53 = vsel %vm238_vm6, %v1171_v13, %v1170_v17  ;;  %v3330_v25 = vsel %vm238_vm6, %v1211_v61, %v1210_v24  ;;  %v3363_v62 = vpop.permute.xlu1 %1001 }
 0x178   : > { %1110 = vrot.lane.b32.xlu0 %v1093_v22, %s2185_s17  ;;  %v3334_v26 = vsel %vm238_vm6, %v1251_v32, %v1250_v0  ;;  %v1058_v30 = vsel %vm235_vm5, %v1057_v41, %v1056_v42  ;;  %v1287_v6 = vsel %vm229_vm3, %v1286_v38, %v1285_v60  ;;  %v1291_v46 = vrot.slane %v1010_v57, 7 }
 0x179   : > { %v3341_v59 = vsel %vm238_vm6, %v1059_v52, %v1058_v30  ;;  %v1289_v2 = vsel %vm232_vm4, %v1288_v28, %v1287_v6  ;;  %v1324_v12 = vrot.slane %v3000_v10, 4  ;;  %v1321_v41 = vsel %vm220_vm0, %v1320_v50, %v1319_v7 }
 0x17a   : > { %4284 = vst [vmem:[#allocation2_spill] sm:$0xff] %v3341_v59  ;;  %v1290_v40 = vsel %vm235_vm5, %v3014_v48, %v1289_v2  ;;  %v1322_v38 = vrot.slane %v3256_v31, 5  ;;  %v1326_v20 = vrot.slane %v3276_v4, 3  ;;  %v1328_v60 = vrot.slane %v1004_v36, 2  ;;  %v3585_v59 = vld [vmem:[%s2228_s14 + $0x4a] sm:$0xff] }
 0x17b   : > { %v3350_v54 = vsel %vm238_vm6, %v1291_v46, %v1290_v40  ;;  %v1330_v33 = vrot.slane %v3014_v48, 1  ;;  %v1432_v1 = vrot.slane %v3309_v37, 1  ;;  %v1472_v31 = vrot.slane %v3309_v37, 2  ;;  %v3376_v3 = vpop.permute.xlu1 %1005 }
 0x17c   : > { %v1323_v28 = vsel %vm223_vm1, %v1322_v38, %v1321_v41  ;;  %v1431_v4 = vrot.slane %v2990_v39, 2  ;;  %v1471_v36 = vrot.slane %v2990_v39, 3  ;;  %v1474_v16 = vrot.slane %v3344_v21, 1 }
 0x17d   : > { %v1325_v10 = vsel %vm226_vm2, %v1324_v12, %v1323_v28  ;;  %v1512_v17 = vrot.slane %v3309_v37, 3  ;;  %v1511_v19 = vrot.slane %v2990_v39, 4  ;;  %v1514_v43 = vrot.slane %v3344_v21, 2 }
 0x17e   : > { %v1327_v11 = vsel %vm229_vm3, %v1326_v20, %v1325_v10  ;;  %v1433_v48 = vsel %vm220_vm0, %v1432_v1, %v1431_v4  ;;  %v1516_v13 = vrot.slane %v3003_v14, 1  ;;  %v1552_v61 = vrot.slane %v3309_v37, 4 }
 0x17f   : > { %v1329_v56 = vsel %vm232_vm4, %v1328_v60, %v1327_v11  ;;  %v3380_v47 = vsel %vm223_vm1, %v3344_v21, %v1433_v48  ;;  %v1513_v0 = vsel %vm220_vm0, %v1512_v17, %v1511_v19  ;;  %v1519_v32 = vrot.slane %v3376_v3, 7  ;;  %v3393_v42 = vpop.permute.xlu1 %1011 }
 0x180   : > { %v1331_v7 = vsel %vm235_vm5, %v1330_v33, %v1329_v56  ;;  %v1515_v52 = vsel %vm223_vm1, %v1514_v43, %v1513_v0  ;;  %v1521_v22 = vrot.slane %v3017_v27, 6  ;;  %v1592_v30 = vrot.slane %v3309_v37, 5 }
 0x181   : > { %v3369_v50 = vsel %vm238_vm6, %v1010_v57, %v1331_v7  ;;  %v1473_v57 = vsel %vm220_vm0, %v1472_v31, %v1471_v36  ;;  %v1517_v6 = vsel %vm226_vm2, %v1516_v13, %v1515_v52  ;;  %v1523_v46 = vrot.slane %v3393_v42, 5 }
 0x182   : > { %v3385_v24 = vsel %vm223_vm1, %v1474_v16, %v1473_v57  ;;  %v1551_v2 = vrot.slane %v2990_v39, 5  ;;  %v1518_v40 = vsel %vm229_vm3, %v3363_v62, %v1517_v6  ;;  %v1554_v12 = vrot.slane %v3344_v21, 3 }
 0x183   : > { %v1556_v41 = vrot.slane %v3003_v14, 2  ;;  %v1558_v38 = vrot.slane %v3363_v62, 1  ;;  %v1632_v20 = vrot.slane %v3309_v37, 6  ;;  %v1520_v60 = vsel %vm232_vm4, %v1519_v32, %v1518_v40 }
 0x184   : > { %v1553_v28 = vsel %vm220_vm0, %v1552_v61, %v1551_v2  ;;  %v1561_v33 = vrot.slane %v3017_v27, 7  ;;  %v1522_v10 = vsel %vm235_vm5, %v1521_v22, %v1520_v60  ;;  %v1563_v56 = vrot.slane %v3393_v42, 6 }
 0x185   : > { %v1555_v11 = vsel %vm223_vm1, %v1554_v12, %v1553_v28  ;;  %v1591_v1 = vrot.slane %v2990_v39, 6  ;;  %v3415_v7 = vsel %vm238_vm6, %v1523_v46, %v1522_v10  ;;  %v1594_v4 = vrot.slane %v3344_v21, 4 }
 0x186   : > { %v1557_v31 = vsel %vm226_vm2, %v1556_v41, %v1555_v11  ;;  %v1596_v48 = vrot.slane %v3003_v14, 3  ;;  %v1598_v17 = vrot.slane %v3363_v62, 2  ;;  %v1600_v57 = vrot.slane %v3376_v3, 1 }
 0x187   : > { %v1559_v36 = vsel %vm229_vm3, %v1558_v38, %v1557_v31  ;;  %v1593_v16 = vsel %vm220_vm0, %v1592_v30, %v1591_v1  ;;  %v1603_v13 = vrot.slane %v3393_v42, 7  ;;  %v1631_v61 = vrot.slane %v2990_v39, 7 }
 0x188   : > { %v1560_v19 = vsel %vm232_vm4, %v3376_v3, %v1559_v36  ;;  %v1595_v43 = vsel %vm223_vm1, %v1594_v4, %v1593_v16  ;;  %v1634_v52 = vrot.slane %v3344_v21, 5  ;;  %v1636_v22 = vrot.slane %v3003_v14, 4 }
 0x189   : > { %v1562_v0 = vsel %vm235_vm5, %v1561_v33, %v1560_v19  ;;  %v1597_v32 = vsel %vm226_vm2, %v1596_v48, %v1595_v43  ;;  %v1633_v46 = vsel %vm220_vm0, %v1632_v20, %v1631_v61  ;;  %v1638_v2 = vrot.slane %v3363_v62, 3 }
 0x18a   : > { %v3434_v30 = vsel %vm238_vm6, %v1563_v56, %v1562_v0  ;;  %v1599_v6 = vsel %vm229_vm3, %v1598_v17, %v1597_v32  ;;  %v1635_v12 = vsel %vm223_vm1, %v1634_v52, %v1633_v46  ;;  %v1640_v41 = vrot.slane %v3376_v3, 2 }
 0x18b   : > { %v1601_v40 = vsel %vm232_vm4, %v1600_v57, %v1599_v6  ;;  %v1642_v38 = vrot.slane %v3017_v27, 1  ;;  %v254_v60 = vrot.slane %v3028_v18, 7  ;;  %v1637_v33 = vsel %vm226_vm2, %v1636_v22, %v1635_v12 }
 0x18c   : > { %v1602_v28 = vsel %vm235_vm5, %v3017_v27, %v1601_v40  ;;  %v1639_v56 = vsel %vm229_vm3, %v1638_v2, %v1637_v33  ;;  %v1359_v1 = vrot.slane %v3309_v37, 7  ;;  %v1361_v43 = vrot.slane %v3344_v21, 6 }
 0x18d   : > { %v3448_v20 = vsel %vm238_vm6, %v1603_v13, %v1602_v28  ;;  %v1641_v31 = vsel %vm232_vm4, %v1640_v41, %v1639_v56  ;;  %v255_v18 = vsel %vm220_vm0, %v254_v60, %v2609_v44  ;;  %v1363_v13 = vrot.slane %v3003_v14, 5 }
 0x18e   : > { %v1643_v4 = vsel %vm235_vm5, %v1642_v38, %v1641_v31  ;;  %v1360_v19 = vsel %vm220_vm0, %v1359_v1, %v2990_v39  ;;  %v1365_v44 = vrot.slane %v3363_v62, 4  ;;  %v1367_v0 = vrot.slane %v3376_v3, 3 }
 0x18f   : > { %v3458_v48 = vsel %vm238_vm6, %v3393_v42, %v1643_v4  ;;  %v1362_v32 = vsel %vm223_vm1, %v1361_v43, %v1360_v19  ;;  %v1369_v52 = vrot.slane %v3017_v27, 2  ;;  %v1371_v2 = vrot.slane %v3393_v42, 1 }
 0x190   : > { %v1364_v46 = vsel %vm226_vm2, %v1363_v13, %v1362_v32  ;;  %v566_v38 = vrot.slane %v3026_v9, 7 }
 0x191   : > { %v1366_v14 = vsel %vm229_vm3, %v1365_v44, %v1364_v46 }
 0x192   : > { %v1368_v41 = vsel %vm232_vm4, %v1367_v0, %v1366_v14  ;;  %v567_v1 = vsel %vm220_vm0, %v566_v38, %v2607_v63 }
 0x193   : > { %v1370_v60 = vsel %vm235_vm5, %v1369_v52, %v1368_v41  ;;  %v1134_v41 = vrot.slane %v3163_v49, 1 }
 0x194   : > { %v3480_v33 = vsel %vm238_vm6, %v1371_v2, %v1370_v60 }
 0x195   : > { %v606_v10 = vpop.permute.xlu1 %605  ;;  %v294_v11 = vpop.permute.xlu0 %293  ;;  %4285 = vst [vmem:[#allocation4_spill] sm:$0xff] %v3480_v33 }
 0x196   : > { %v853_v36 = vsel %vm850_vm7, %v255_v18, %v294_v11  ;;  %v880_v31 = vsel %vm850_vm7, %v567_v1, %v606_v10 }
 0x199   : > { %v334_v16 = vpop.permute.xlu1 %333  ;;  %v374_v17 = vpop.permute.xlu0 %373 }
 0x19a   : > { %v857_v57 = vsel %vm854_vm8, %v853_v36, %v334_v16 }
 0x19b   : > { %v861_v61 = vsel %vm858_vm9, %v857_v57, %v374_v17 }
 0x19d   : > { %v414_v22 = vpop.permute.xlu1 %413  ;;  %v454_v6 = vpop.permute.xlu0 %453 }
 0x19e   : > { %v865_v40 = vsel %vm862_vm10, %v861_v61, %v414_v22 }
 0x19f   : > { %v869_v12 = vsel %vm866_vm12, %v865_v40, %v454_v6  ;;  %v1100_v6 = vrot.slane %v3189_v35, 5 }
 0x1a1   : > { %v494_v28 = vpop.permute.xlu1 %493  ;;  %v534_v27 = vpop.permute.xlu0 %533 }
 0x1a2   : > { %v873_v11 = vsel %vm870_vm11, %v869_v12, %v494_v28  ;;  %v1106_v28 = vrot.slane %v2979_v34, 2 }
 0x1a3   : > { %v3484_v56 = vsel %vm874_vm13, %v873_v11, %v534_v27  ;;  %v1174_v11 = vrot.slane %v3163_v49, 2 }
 0x1a5   : > { %v686_v4 = vpop.permute.xlu1 %685  ;;  %v646_v18 = vpop.permute.xlu0 %645 }
 0x1a6   : > { %v883_v9 = vsel %vm854_vm8, %v880_v31, %v646_v18 }
 0x1a7   : > { %v886_v36 = vsel %vm858_vm9, %v883_v9, %v686_v4 }
 0x1a9   : > { %v766_v16 = vpop.permute.xlu1 %765  ;;  %v726_v17 = vpop.permute.xlu0 %725 }
 0x1aa   : > { %v889_v57 = vsel %vm862_vm10, %v886_v36, %v726_v17 }
 0x1ab   : > { %v892_v19 = vsel %vm866_vm12, %v889_v57, %v766_v16 }
 0x1ad   : > { %v806_v43 = vpop.permute.xlu0 %805  ;;  %v3526_v9 = vpop.permute.xlu1 %1015 }
 0x1ae   : > { %v3494_v13 = vsel %vm870_vm11, %v892_v19, %v806_v43  ;;  %v1139_v19 = vrot.slane %v3189_v35, 6 }
 0x1b1   : > { %v3496_v61 = vpop.permute.xlu0 %1013 }
 0x1b2   : > { %v1094_v63 = vrot.slane %v3496_v61, 1  ;;  %v1133_v12 = vrot.slane %v3496_v61, 2  ;;  %v1173_v27 = vrot.slane %v3496_v61, 3  ;;  %v1333_v51 = vrot.slane %v3496_v61, 7 }
 0x1b4   : > { %v1095_v44 = vsel %vm220_vm0, %v3163_v49, %v1094_v63  ;;  %v1135_v31 = vsel %vm220_vm0, %v1134_v41, %v1133_v12  ;;  %v1175_v17 = vsel %vm220_vm0, %v1174_v11, %v1173_v27  ;;  %v1254_v41 = vrot.slane %v3163_v49, 4 }
 0x1b5   : > { %v3499_v10 = vpop.permute.xlu0 %1019  ;;  %v1392_v11 = vrot.slane %v2990_v39, 1  ;;  %v1334_v39 = vrot.slane %v3163_v49, 6 }
 0x1b6   : > { %v1096_v0 = vrot.slane %v3499_v10, 7  ;;  %v1176_v18 = vrot.slane %v3499_v10, 1  ;;  %v1136_v57 = vsel %vm223_vm1, %v3499_v10, %v1135_v31 }
 0x1b8   : > { %v1097_v52 = vsel %vm223_vm1, %v1096_v0, %v1095_v44  ;;  %v1177_v43 = vsel %vm223_vm1, %v1176_v18, %v1175_v17  ;;  %v1145_v44 = vrot.slane %v2979_v34, 3  ;;  %v1179_v0 = vrot.slane %v3189_v35, 7 }
 0x1b9   : > { %v3504_v32 = vpop.permute.xlu0 %1023  ;;  %v1216_v18 = vrot.slane %v3499_v10, 2  ;;  %v1293_v17 = vrot.slane %v3496_v61, 6 }
 0x1ba   : > { %v1098_v22 = vrot.slane %v3504_v32, 6  ;;  %v1137_v16 = vrot.slane %v3504_v32, 7 }
 0x1bc   : > { %v1099_v46 = vsel %vm226_vm2, %v1098_v22, %v1097_v52  ;;  %v1138_v63 = vsel %vm226_vm2, %v1137_v16, %v1136_v57  ;;  %v3541_v52 = vpop.permute.xlu1 %1021  ;;  %v1213_v22 = vrot.slane %v3496_v61, 4  ;;  %v1260_v57 = vrot.slane %v3189_v35, 1 }
 0x1bd   : > { %v3510_v2 = vpop.permute.xlu0 %1029  ;;  %v1101_v40 = vsel %vm229_vm3, %v1100_v6, %v1099_v46  ;;  %v1178_v46 = vsel %vm226_vm2, %v3504_v32, %v1177_v43  ;;  %v1140_v12 = vsel %vm229_vm3, %v1139_v19, %v1138_v63 }
 0x1be   : > { %v1102_v14 = vrot.slane %v3510_v2, 4  ;;  %v1141_v6 = vrot.slane %v3510_v2, 5  ;;  %v1181_v27 = vrot.slane %v3510_v2, 6  ;;  %v1180_v31 = vsel %vm229_vm3, %v1179_v0, %v1178_v46 }
 0x1bf   : > { %v1256_v0 = vrot.slane %v3499_v10, 3  ;;  %v1294_v46 = vrot.slane %v3163_v49, 5 }
 0x1c0   : > { %v1103_v60 = vsel %vm232_vm4, %v1102_v14, %v1101_v40  ;;  %v1214_v40 = vrot.slane %v3163_v49, 3  ;;  %v1253_v14 = vrot.slane %v3496_v61, 5 }
 0x1c1   : > { %v3516_v38 = vpop.permute.xlu0 %1033 }
 0x1c2   : > { %v1104_v1 = vrot.slane %v3516_v38, 3  ;;  %v1215_v16 = vsel %vm220_vm0, %v1214_v40, %v1213_v22  ;;  %v1183_v43 = vrot.slane %v3516_v38, 5  ;;  %v1255_v63 = vsel %vm220_vm0, %v1254_v41, %v1253_v14 }
 0x1c3   : > { %v1182_v40 = vsel %vm232_vm4, %v1181_v27, %v1180_v31  ;;  %v1217_v41 = vsel %vm223_vm1, %v1216_v18, %v1215_v16  ;;  %v1265_v27 = vrot.slane %v3585_v59, 6  ;;  %v1300_v31 = vrot.slane %v3189_v35, 2 }
 0x1c4   : > { %v1105_v4 = vsel %vm235_vm5, %v1104_v1, %v1103_v60  ;;  %v1108_v60 = vrot.slane %v3217_v15, 1  ;;  %v1143_v1 = vrot.slane %v3516_v38, 4  ;;  %v1257_v18 = vsel %vm223_vm1, %v1256_v0, %v1255_v63 }
 0x1c5   : > { %v1107_v36 = vsel %vm238_vm6, %v1106_v28, %v1105_v4  ;;  %v1147_v28 = vrot.slane %v3217_v15, 2  ;;  %v3570_v4 = vpop.permute.xlu1 %845  ;;  %v1393_v63 = vsel %vm220_vm0, %v3309_v37, %v1392_v11  ;;  %v1061_v0 = vrot.slane %v3163_v49, 7  ;;  %v3616_v37 = vld [vmem:[%s2228_s14 + $0x39] sm:$0xff] }
 0x1c6   : > { %1112 = vrot.lane.b32.xlu1 %v1107_v36, %s2185_s17  ;;  %v1142_v36 = vsel %vm232_vm4, %v1141_v6, %v1140_v12  ;;  %v1218_v12 = vrot.slane %v3504_v32, 1  ;;  %v1396_v49 = vrot.slane %v3616_v37, 6 }
 0x1c7   : > { %v1144_v14 = vsel %vm235_vm5, %v1143_v1, %v1142_v36  ;;  %v1184_v1 = vsel %vm235_vm5, %v1183_v43, %v1182_v40  ;;  %v1340_v43 = vrot.slane %v3189_v35, 3  ;;  %v1221_v40 = vrot.slane %v3510_v2, 7 }
 0x1c8   : > { %v1219_v16 = vsel %vm226_vm2, %v1218_v12, %v1217_v41 }
 0x1c9   : > { %v3594_v36 = vpop.permute.xlu1 %1025 }
 0x1ca   : > { %1150 = vrot.lane.b32.xlu1 %v3324_v8, %s2186_s18  ;;  %v1185_v8 = vrot.slane %v2979_v34, 4 }
 0x1d4   : > { %v3564_v19 = vpop.permute.xlu0 %1043 }
 0x1d5   : > { %v1109_v22 = vsel %vm220_vm0, %v3564_v19, %v1108_v60  ;;  %v1148_v6 = vrot.slane %v3564_v19, 1  ;;  %v1258_v60 = vrot.slane %v3504_v32, 2 }
 0x1d6   : > { %1114 = vrot.lane.b32.xlu0 %v1109_v22, %s2185_s17  ;;  %v1296_v22 = vrot.slane %v3499_v10, 4 }
 0x1d7   : > { %v1149_v33 = vsel %vm220_vm0, %v1148_v6, %v1147_v28  ;;  %v1146_v28 = vsel %vm238_vm6, %v1145_v44, %v1144_v14  ;;  %v1394_v6 = vrot.slane %v3344_v21, 7  ;;  %v1186_v44 = vsel %vm238_vm6, %v1185_v8, %v1184_v1 }
 0x1d8   : > { %1154 = vrot.lane.b32.xlu1 %v1149_v33, %s2186_s18  ;;  %v1295_v33 = vsel %vm220_vm0, %v1294_v46, %v1293_v17  ;;  %v1259_v12 = vsel %vm226_vm2, %v1258_v60, %v1257_v18  ;;  %v1336_v14 = vrot.slane %v3499_v10, 5  ;;  %v1220_v21 = vsel %vm229_vm3, %v3189_v35, %v1219_v16 }
 0x1d9   : > { %v1298_v17 = vrot.slane %v3504_v32, 3  ;;  %v1335_v46 = vsel %vm220_vm0, %v1334_v39, %v1333_v51  ;;  %v1188_v8 = vrot.slane %v3564_v19, 2  ;;  %v1297_v11 = vsel %vm223_vm1, %v1296_v22, %v1295_v33 }
 0x1da   : > { %1152 = vrot.lane.b32.xlu0 %v1146_v28, %s2186_s18  ;;  %v1395_v41 = vsel %vm223_vm1, %v1394_v6, %v1393_v63  ;;  %v1398_v60 = vrot.slane %v3363_v62, 5  ;;  %v1223_v1 = vrot.slane %v3516_v38, 6  ;;  %v1261_v18 = vsel %vm229_vm3, %v1260_v57, %v1259_v12  ;;  %v3629_v28 = vpop.permute.xlu1 %1031 }
 0x1db   : > { %v1067_v51 = vrot.slane %v3189_v35, 4  ;;  %v1373_v39 = vrot.slane %v3140_v55, 7  ;;  %v1228_v16 = vrot.slane %v3564_v19, 3  ;;  %v1222_v22 = vsel %vm232_vm4, %v1221_v40, %v1220_v21 }
 0x1dc   : > { %1192 = vrot.lane.b32.xlu1 %v1186_v44, %s2187_s19  ;;  %v1337_v6 = vsel %vm223_vm1, %v1336_v14, %v1335_v46  ;;  %v1062_v33 = vsel %vm220_vm0, %v1061_v0, %v3496_v61  ;;  %v1299_v57 = vsel %vm226_vm2, %v1298_v17, %v1297_v11  ;;  %v1338_v63 = vrot.slane %v3504_v32, 4 }
 0x1dd   : > { %v1063_v44 = vrot.slane %v3499_v10, 6  ;;  %v4286_v12 = vrot.slane %v3217_v15, 3  ;;  %v1262_v14 = vsel %vm232_vm4, %v3510_v2, %v1261_v18  ;;  %v1065_v61 = vrot.slane %v3504_v32, 5 }
 0x1de   : > { %1190 = vrot.lane.b32.xlu0 %v3327_v53, %s2187_s19  ;;  %v1263_v53 = vrot.slane %v3516_v38, 7  ;;  %v1069_v0 = vrot.slane %v3510_v2, 3  ;;  %v1071_v17 = vrot.slane %v3516_v38, 2  ;;  %v3656_v10 = vsel %vm874_vm13, %v3494_v13, %v3570_v4 }
 0x1df   : > { %v1189_v40 = vsel %vm220_vm0, %v1188_v8, %v4286_v12  ;;  %v1064_v21 = vsel %vm223_vm1, %v1063_v44, %v1062_v33  ;;  %v4287_v46 = vrot.slane %v3217_v15, 4  ;;  %v1374_v11 = vsel %vm220_vm0, %v1373_v39, %v3526_v9  ;;  %v3670_v33 = vpop.permute.xlu1 %1035 }
 0x1e0   : > { %1230 = vrot.lane.b32.xlu1 %v3330_v25, %s2188_s20  ;;  %v1224_v25 = vsel %vm235_vm5, %v1223_v1, %v1222_v22  ;;  %v1066_v32 = vsel %vm226_vm2, %v1065_v61, %v1064_v21  ;;  %v1375_v1 = vrot.slane %v3541_v52, 6  ;;  %v1264_v18 = vsel %vm235_vm5, %v1263_v53, %v1262_v14 }
 0x1e1   : > { %v1229_v8 = vsel %vm220_vm0, %v1228_v16, %v4287_v46  ;;  %v1068_v22 = vsel %vm229_vm3, %v1067_v51, %v1066_v32  ;;  %v1377_v13 = vrot.slane %v3594_v36, 5  ;;  %v1379_v4 = vrot.slane %v3192_v5, 4 }
 0x1e2   : > { %1194 = vrot.lane.b32.xlu0 %v1189_v40, %s2187_s19  ;;  %v4288_v16 = vrot.slane %v2979_v34, 5  ;;  %v1070_v39 = vsel %vm232_vm4, %v1069_v0, %v1068_v22  ;;  %v1376_v12 = vsel %vm223_vm1, %v1375_v1, %v1374_v11  ;;  %v1381_v40 = vrot.slane %v3629_v28, 3 }
 0x1e3   : > { %v1406_v53 = vrot.slane %v3526_v9, 1  ;;  %v3681_v51 = vsel %vm235_vm5, %v1071_v17, %v1070_v39  ;;  %v1378_v14 = vsel %vm226_vm2, %v1377_v13, %v1376_v12  ;;  %v1383_v61 = vrot.slane %v3670_v33, 2  ;;  %v3732_v39 = vld [vmem:[%s2228_s14 + $0x3a] sm:$0xff] }
 0x1e4   : > { %1234 = vrot.lane.b32.xlu1 %v1229_v8, %s2188_s20  ;;  %v1226_v44 = vsel %vm238_vm6, %v4288_v16, %v1224_v25  ;;  %v1266_v34 = vsel %vm238_vm6, %v1265_v27, %v1264_v18  ;;  %v1302_v0 = vrot.slane %v3510_v2, 1  ;;  %v1339_v25 = vsel %vm226_vm2, %v1338_v63, %v1337_v6 }
 0x1e5   : > { %v1380_v21 = vsel %vm229_vm3, %v1379_v4, %v1378_v14  ;;  %v1301_v17 = vsel %vm229_vm3, %v1300_v31, %v1299_v57  ;;  %v1397_v46 = vsel %vm226_vm2, %v1396_v49, %v1395_v41  ;;  %v1446_v8 = vrot.slane %v3140_v55, 1 }
 0x1e6   : > { %1232 = vrot.lane.b32.xlu0 %v1226_v44, %s2188_s20  ;;  %v1382_v32 = vsel %vm232_vm4, %v1381_v40, %v1380_v21  ;;  %v1445_v27 = vrot.slane %v3526_v9, 2  ;;  %v1268_v11 = vrot.slane %v3564_v19, 4  ;;  %v1342_v6 = vrot.slane %v3510_v2, 2 }
 0x1e7   : > { %v3702_v63 = vsel %vm235_vm5, %v1383_v61, %v1382_v32  ;;  %v1267_v31 = vrot.slane %v3217_v15, 5  ;;  %v1341_v49 = vsel %vm229_vm3, %v1340_v43, %v1339_v25  ;;  %v1408_v41 = vrot.slane %v3541_v52, 7 }
 0x1e8   : > { %1272 = vrot.lane.b32.xlu1 %v1266_v34, %s2189_s21  ;;  %v1308_v57 = vrot.slane %v3564_v19, 5  ;;  %v1303_v1 = vsel %vm232_vm4, %v1302_v0, %v1301_v17  ;;  %v1400_v2 = vrot.slane %v3376_v3, 4  ;;  %v1407_v18 = vsel %vm220_vm0, %v3140_v55, %v1406_v53 }
 0x1e9   : > { %v1305_v35 = vrot.slane %v3585_v59, 7  ;;  %v1344_v43 = vrot.slane %v3516_v38, 1  ;;  %v1399_v22 = vsel %vm229_vm3, %v1398_v60, %v1397_v46  ;;  %v1269_v13 = vsel %vm220_vm0, %v1268_v11, %v1267_v31 }
 0x1ea   : > { %1270 = vrot.lane.b32.xlu0 %v3334_v26, %s2189_s21  ;;  %v1307_v26 = vrot.slane %v3217_v15, 6  ;;  %v1343_v4 = vsel %vm232_vm4, %v1342_v6, %v1341_v49  ;;  %v1410_v16 = vrot.slane %v3594_v36, 6  ;;  %v1447_v44 = vsel %vm220_vm0, %v1446_v8, %v1445_v27  ;;  %v3755_v6 = vld [vmem:[%s2228_s14 + $0x52] sm:$0xff] }
 0x1eb   : > { %v1402_v12 = vrot.slane %v3732_v39, 3  ;;  %v1404_v40 = vrot.slane %v3393_v42, 2  ;;  %v1409_v60 = vsel %vm223_vm1, %v1408_v41, %v1407_v18  ;;  %v1401_v14 = vsel %vm232_vm4, %v1400_v2, %v1399_v22 }
 0x1ec   : > { %1310 = vrot.lane.b32.xlu1 %v3350_v54, %s2190_s22  ;;  %v1304_v54 = vsel %vm235_vm5, %v3516_v38, %v1303_v1  ;;  %v1309_v53 = vsel %vm220_vm0, %v1308_v57, %v1307_v26  ;;  %v1347_v61 = vrot.slane %v3217_v15, 7  ;;  %v1449_v34 = vrot.slane %v3594_v36, 7 }
 0x1ed   : > { %v1345_v38 = vsel %vm235_vm5, %v1344_v43, %v1343_v4  ;;  %v1412_v0 = vrot.slane %v3192_v5, 5  ;;  %v1448_v25 = vsel %vm223_vm1, %v3541_v52, %v1447_v44  ;;  %v1435_v21 = vrot.slane %v3616_v37, 7 }
 0x1ee   : > { %1274 = vrot.lane.b32.xlu0 %v1269_v13, %s2189_s21  ;;  %v1485_v17 = vrot.slane %v3526_v9, 3  ;;  %v1306_v46 = vsel %vm238_vm6, %v1305_v35, %v1304_v54  ;;  %v1411_v8 = vsel %vm226_vm2, %v1410_v16, %v1409_v60  ;;  %v1486_v32 = vrot.slane %v3140_v55, 2  ;;  %v3770_v35 = vld [vmem:[%s2228_s14 + $0x50] sm:$0xff] }
 0x1ef   : > { %v1403_v27 = vsel %vm235_vm5, %v1402_v12, %v1401_v14  ;;  %v1420_v11 = vrot.slane %v3237_v58, 1  ;;  %v1418_v31 = vrot.slane %v3755_v6, 2  ;;  %v1451_v49 = vrot.slane %v3192_v5, 6 }
 0x1f0   : > { %1314 = vrot.lane.b32.xlu1 %v1309_v53, %s2190_s22  ;;  %v1346_v41 = vsel %vm238_vm6, %v3585_v59, %v1345_v38  ;;  %v1414_v57 = vrot.slane %v3629_v28, 4  ;;  %v1450_v1 = vsel %vm226_vm2, %v1449_v34, %v1448_v25  ;;  %v1437_v55 = vrot.slane %v3363_v62, 6  ;;  %v3789_v38 = vpop.permute.xlu1 %1045 }
 0x1f1   : > { %v1413_v2 = vsel %vm229_vm3, %v1412_v0, %v1411_v8  ;;  %v1436_v18 = vsel %vm226_vm2, %v1435_v21, %v3380_v47  ;;  %v1488_v26 = vrot.slane %v3541_v52, 1  ;;  %v1526_v43 = vrot.slane %v3770_v35, 3 }
 0x1f2   : > { %1312 = vrot.lane.b32.xlu0 %v1306_v46, %s2190_s22  ;;  %v1525_v22 = vrot.slane %v3526_v9, 4  ;;  %v1348_v13 = vrot.slane %v3564_v19, 6  ;;  %v1453_v4 = vrot.slane %v3629_v28, 5  ;;  %v1487_v16 = vsel %vm220_vm0, %v1486_v32, %v1485_v17 }
 0x1f3   : > { %v1416_v44 = vrot.slane %v3670_v33, 3  ;;  %v1452_v47 = vsel %vm229_vm3, %v1451_v49, %v1450_v1  ;;  %v1439_v54 = vrot.slane %v3376_v3, 5  ;;  %v1477_v12 = vrot.slane %v3363_v62, 7 }
 0x1f4   : > { %1352 = vrot.lane.b32.xlu1 %v1346_v41, %s2191_s23  ;;  %v1405_v60 = vsel %vm238_vm6, %v1404_v40, %v1403_v27  ;;  %v1415_v53 = vsel %vm232_vm4, %v1414_v57, %v1413_v2  ;;  %v1438_v14 = vsel %vm229_vm3, %v1437_v55, %v1436_v18  ;;  %v1476_v34 = vsel %vm226_vm2, %v3616_v37, %v3385_v24 }
 0x1f5   : > { %v1441_v0 = vrot.slane %v3732_v39, 4  ;;  %v1489_v62 = vsel %vm223_vm1, %v1488_v26, %v1487_v16  ;;  %v1528_v40 = vrot.slane %v3541_v52, 2  ;;  %v1349_v25 = vsel %vm220_vm0, %v1348_v13, %v1347_v61 }
 0x1f6   : > { %1350 = vrot.lane.b32.xlu0 %v3369_v50, %s2191_s23  ;;  %v1455_v50 = vrot.slane %v3670_v33, 4  ;;  %v1454_v21 = vsel %vm232_vm4, %v1453_v4, %v1452_v47  ;;  %v1479_v17 = vrot.slane %v3376_v3, 6  ;;  %v1527_v24 = vsel %vm220_vm0, %v1526_v43, %v1525_v22 }
 0x1f7   : > { %v1417_v37 = vsel %vm235_vm5, %v1416_v44, %v1415_v53  ;;  %v1440_v46 = vsel %vm232_vm4, %v1439_v54, %v1438_v14  ;;  %v1478_v8 = vsel %vm229_vm3, %v1477_v12, %v1476_v34  ;;  %v1491_v32 = vrot.slane %v3192_v5, 7  ;;  %v2158_v14 = vld [vmem:[%s2228_s14 + $0x51] sm:$0xff] }
 0x1f8   : > { %1422 = vrot.lane.b32.xlu1 %v1405_v60, %s2185_s17  ;;  %v1421_v27 = vsel %vm220_vm0, %v3789_v38, %v1420_v11  ;;  %v1457_v61 = vrot.slane %v3755_v6, 3  ;;  %v1490_v3 = vsel %vm226_vm2, %v3594_v36, %v1489_v62  ;;  %v1530_v49 = vrot.slane %v3594_v36, 1 }
 0x1f9   : > { %v1456_v41 = vsel %vm235_vm5, %v1455_v50, %v1454_v21  ;;  %v1443_v57 = vrot.slane %v3393_v42, 3  ;;  %v1481_v1 = vrot.slane %v3732_v39, 5  ;;  %v1529_v5 = vsel %vm223_vm1, %v1528_v40, %v1527_v24 }
 0x1fa   : > { %1354 = vrot.lane.b32.xlu0 %v1349_v25, %s2191_s23  ;;  %v1419_v55 = vsel %vm238_vm6, %v1418_v31, %v1417_v37  ;;  %v1442_v11 = vsel %vm235_vm5, %v1441_v0, %v1440_v46  ;;  %v1480_v2 = vsel %vm232_vm4, %v1479_v17, %v1478_v8  ;;  %v1493_v18 = vrot.slane %v3629_v28, 6 }
 0x1fb   : > { %v1483_v26 = vrot.slane %v3393_v42, 4  ;;  %v1492_v43 = vsel %vm229_vm3, %v1491_v32, %v1490_v3  ;;  %v1565_v22 = vrot.slane %v3526_v9, 5  ;;  %v1458_v39 = vsel %vm238_vm6, %v1457_v61, %v1456_v41 }
 0x1fc   : > { %1426 = vrot.lane.b32.xlu1 %v1421_v27, %s2185_s17  ;;  %v1531_v13 = vsel %vm226_vm2, %v1530_v49, %v1529_v5  ;;  %v1566_v31 = vrot.slane %v3770_v35, 4  ;;  %v1444_v4 = vsel %vm238_vm6, %v1443_v57, %v1442_v11  ;;  %v1482_v16 = vsel %vm235_vm5, %v1481_v1, %v1480_v2 }
 0x1fd   : > { %v1495_v44 = vrot.slane %v3670_v33, 5  ;;  %v1606_v42 = vrot.slane %v3770_v35, 5  ;;  %v1605_v47 = vrot.slane %v3526_v9, 6  ;;  %v1460_v54 = vrot.slane %v3789_v38, 1 }
 0x1fe   : > { %1424 = vrot.lane.b32.xlu0 %v1419_v55, %s2185_s17  ;;  %v1494_v12 = vsel %vm232_vm4, %v1493_v18, %v1492_v43  ;;  %v1533_v60 = vrot.slane %v3629_v28, 7  ;;  %v1459_v53 = vrot.slane %v3237_v58, 2  ;;  %v1532_v34 = vsel %vm229_vm3, %v2158_v14, %v1531_v13 }
 0x1ff   : > { %v1568_v50 = vrot.slane %v3541_v52, 3  ;;  %v1484_v0 = vsel %vm238_vm6, %v1483_v26, %v1482_v16  ;;  %v1497_v62 = vrot.slane %v3755_v6, 4  ;;  %v1567_v40 = vsel %vm220_vm0, %v1566_v31, %v1565_v22 }
 0x200   : > { %1464 = vrot.lane.b32.xlu1 %v1458_v39, %s2186_s18  ;;  %v1646_v25 = vrot.slane %v3770_v35, 6  ;;  %v1645_v21 = vrot.slane %v3526_v9, 7  ;;  %v1496_v17 = vsel %vm235_vm5, %v1495_v44, %v1494_v12  ;;  %v1535_v24 = vrot.slane %v3670_v33, 6 }
 0x201   : > { %v1608_v37 = vrot.slane %v3541_v52, 4  ;;  %v1461_v46 = vsel %vm220_vm0, %v1460_v54, %v1459_v53  ;;  %v1534_v8 = vsel %vm232_vm4, %v1533_v60, %v1532_v34  ;;  %v1570_v32 = vrot.slane %v3594_v36, 2 }
 0x202   : > { %1462 = vrot.lane.b32.xlu0 %v1444_v4, %s2186_s18  ;;  %v1607_v27 = vsel %vm220_vm0, %v1606_v42, %v1605_v47  ;;  %v1569_v9 = vsel %vm223_vm1, %v1568_v50, %v1567_v40  ;;  %v1498_v35 = vsel %vm238_vm6, %v1497_v62, %v1496_v17  ;;  %v1537_v61 = vrot.slane %v3755_v6, 5 }
 0x203   : > { %v1610_v3 = vrot.slane %v3594_v36, 3  ;;  %v1536_v49 = vsel %vm235_vm5, %v1535_v24, %v1534_v8  ;;  %v1572_v41 = vrot.slane %v2158_v14, 1  ;;  %v1609_v57 = vsel %vm223_vm1, %v1608_v37, %v1607_v27 }
 0x204   : > { %1502 = vrot.lane.b32.xlu1 %v1484_v0, %s2187_s19  ;;  %v1648_v1 = vrot.slane %v3541_v52, 5  ;;  %v1571_v5 = vsel %vm226_vm2, %v1570_v32, %v1569_v9  ;;  %v1647_v55 = vsel %vm220_vm0, %v1646_v25, %v1645_v21  ;;  %v1612_v11 = vrot.slane %v2158_v14, 2  ;;  %v1111_v9 = vpop.permute.xlu0 %1110 }
 0x205   : > { %v1538_v2 = vsel %vm238_vm6, %v1537_v61, %v1536_v49  ;;  %v1500_v18 = vrot.slane %v3789_v38, 2  ;;  %v1611_v26 = vsel %vm226_vm2, %v1610_v3, %v1609_v57  ;;  %v1650_v43 = vrot.slane %v3594_v36, 4 }
 0x206   : > { %1466 = vrot.lane.b32.xlu0 %v1461_v46, %s2186_s18  ;;  %v1573_v52 = vsel %vm229_vm3, %v1572_v41, %v1571_v5  ;;  %v1649_v22 = vsel %vm223_vm1, %v1648_v1, %v1647_v55  ;;  %v1499_v39 = vrot.slane %v3237_v58, 3  ;;  %v1614_v13 = vrot.slane %v3629_v28, 1  ;;  %v4289_v41 = vld [vmem:[#allocation3_spill] sm:$0xff] }
 0x207   : > { %v1613_v31 = vsel %vm229_vm3, %v1612_v11, %v1611_v26  ;;  %v1652_v4 = vrot.slane %v2158_v14, 3  ;;  %v1574_v16 = vsel %vm232_vm4, %v3629_v28, %v1573_v52  ;;  %v1651_v44 = vsel %vm226_vm2, %v1650_v43, %v1649_v22 }
 0x208   : > { %1504 = vrot.lane.b32.xlu1 %v1498_v35, %s2187_s19  ;;  %v1501_v36 = vsel %vm220_vm0, %v1500_v18, %v1499_v39  ;;  %v1577_v42 = vrot.slane %v3755_v6, 6  ;;  %v1615_v47 = vsel %vm232_vm4, %v1614_v13, %v1613_v31  ;;  %v1617_v60 = vrot.slane %v3755_v6, 7 }
 0x209   : > { %v1653_v12 = vsel %vm229_vm3, %v1652_v4, %v1651_v44  ;;  %v1616_v53 = vsel %vm235_vm5, %v3670_v33, %v1615_v47  ;;  %v1656_v14 = vrot.slane %v3670_v33, 1  ;;  %v1539_v0 = vrot.slane %v3237_v58, 4 }
 0x20a   : > { %1542 = vrot.lane.b32.xlu0 %v3415_v7, %s2188_s20  ;;  %v1575_v7 = vrot.slane %v3670_v33, 7  ;;  %v1618_v50 = vsel %vm238_vm6, %v1617_v60, %v1616_v53  ;;  %v1580_v33 = vrot.slane %v3789_v38, 4  ;;  %v1579_v25 = vrot.slane %v3237_v58, 5 }
 0x20b   : > { %v1660_v21 = vrot.slane %v3789_v38, 6  ;;  %v1659_v24 = vrot.slane %v3237_v58, 7  ;;  %v1620_v37 = vrot.slane %v3789_v38, 5  ;;  %v1619_v8 = vrot.slane %v3237_v58, 6 }
 0x20c   : > { %1544 = vrot.lane.b32.xlu1 %v1538_v2, %s2188_s20  ;;  %v1576_v54 = vsel %vm235_vm5, %v1575_v7, %v1574_v16  ;;  %v1581_v17 = vsel %vm220_vm0, %v1580_v33, %v1579_v25  ;;  %v1073_v7 = vrot.slane %v3585_v59, 1  ;;  %v4291_v25 = vld [vmem:[#allocation4_spill] sm:$0xff] }
 0x20d   : > { %v1578_v34 = vsel %vm238_vm6, %v1577_v42, %v1576_v54  ;;  %v1661_v46 = vsel %vm220_vm0, %v1660_v21, %v1659_v24  ;;  %v1621_v32 = vsel %vm220_vm0, %v1620_v37, %v1619_v8  ;;  %v1075_v42 = vrot.slane %v3564_v19, 7 }
 0x20e   : > { %1582 = vrot.lane.b32.xlu0 %v3434_v30, %s2189_s21  ;;  %v1654_v30 = vrot.slane %v3629_v28, 2  ;;  %v1540_v28 = vrot.slane %v3789_v38, 3  ;;  %v1074_v16 = vsel %vm238_vm6, %v1073_v7, %v3681_v51  ;;  %v1385_v8 = vrot.slane %v3755_v6, 1 }
 0x20f   : > { %v1076_v60 = vsel %vm220_vm0, %v1075_v42, %v3217_v15 }
 0x210   : > { %1506 = vrot.lane.b32.xlu1 %v1501_v36, %s2187_s19  ;;  %v1541_v62 = vsel %vm220_vm0, %v1540_v28, %v1539_v0 }
 0x212   : > { %1622 = vrot.lane.b32.xlu0 %v3448_v20, %s2190_s22  ;;  %v1655_v20 = vsel %vm232_vm4, %v1654_v30, %v1653_v12 }
 0x214   : > { %1662 = vrot.lane.b32.xlu1 %v3458_v48, %s2191_s23  ;;  %v1657_v48 = vsel %vm235_vm5, %v1656_v14, %v1655_v20 }
 0x215   : > { %v1658_v40 = vsel %vm238_vm6, %v3755_v6, %v1657_v48 }
 0x216   : > { %1584 = vrot.lane.b32.xlu0 %v1578_v34, %s2189_s21 }
 0x218   : > { %1624 = vrot.lane.b32.xlu1 %v1618_v50, %s2190_s22 }
 0x21a   : > { %1546 = vrot.lane.b32.xlu0 %v1541_v62, %s2188_s20 }
 0x21c   : > { %1664 = vrot.lane.b32.xlu1 %v1658_v40, %s2191_s23 }
 0x21e   : > { %1586 = vrot.lane.b32.xlu0 %v1581_v17, %s2189_s21 }
 0x220   : > { %1666 = vrot.lane.b32.xlu1 %v1661_v46, %s2191_s23 }
 0x222   : > { %1626 = vrot.lane.b32.xlu0 %v1621_v32, %s2190_s22 }
 0x238   : > { %v1113_v27 = vpop.permute.xlu1 %1112 }
 0x239   : > { %v1672_v47 = vsel %vm850_vm7, %v1074_v16, %v1113_v27 }
 0x23c   : > { %v1151_v35 = vpop.permute.xlu1 %1150 }
 0x240   : > { %899 = vxpose.xlu0.b32.start [1/3] (short) %v3157_v23, 128 }
 0x244   : > { %900 = vxpose.xlu0.b32.cont [2/3] (short) %v3170_v45, 128 }
 0x248   : > { %901 = vxpose.xlu0.b32.end [3/3] (short) %v3484_v56, 128  ;;  %v1115_v61 = vpop.permute.xlu0 %1114 }
 0x249   : > { %931 = vxpose.xlu1.b32.start [1/3] (short) %v3212_v29, 128  ;;  %v1673_v14 = vsel %vm850_vm7, %v1076_v60, %v1115_v61 }
 0x24a   : > { %v1155_v3 = vpop.permute.xlu1 %1154 }
 0x24b   : > { %v1676_v50 = vsel %vm854_vm8, %v1673_v14, %v1155_v3 }
 0x24c   : > { %v1153_v49 = vpop.permute.xlu0 %1152 }
 0x24d   : > { %932 = vxpose.xlu1.b32.cont [2/3] (short) %v4289_v41, 128  ;;  %v1675_v12 = vsel %vm854_vm8, %v1672_v47, %v1153_v49  ;;  %v1386_v49 = vsel %vm238_vm6, %v1385_v8, %v3702_v63 }
 0x24e   : > { %v1193_v57 = vpop.permute.xlu1 %1192 }
 0x24f   : > { %v1678_v51 = vsel %vm858_vm9, %v1675_v12, %v1193_v57 }
 0x250   : > { %v1191_v1 = vpop.permute.xlu0 %1190 }
 0x251   : > { %933 = vxpose.xlu1.b32.end [3/3] (short) %v3656_v10, 128  ;;  %v4290_v10 = vld [vmem:[#allocation2_spill] sm:$0xff] }
 0x252   : > { %v1231_v5 = vpop.permute.xlu1 %1230  ;;  %v1671_v4 = vsel %vm850_vm7, %v4290_v10, %v1111_v9 }
 0x253   : > { %v1674_v44 = vsel %vm854_vm8, %v1671_v4, %v1151_v35 }
 0x254   : > { %v1195_v55 = vpop.permute.xlu0 %1194  ;;  %v1677_v30 = vsel %vm858_vm9, %v1674_v44, %v1191_v1 }
 0x255   : > { %v1680_v53 = vsel %vm862_vm10, %v1677_v30, %v1231_v5  ;;  %v1679_v48 = vsel %vm858_vm9, %v1676_v50, %v1195_v55 }
 0x256   : > { %v1235_v23 = vpop.permute.xlu1 %1234 }
 0x257   : > { %v1682_v24 = vsel %vm862_vm10, %v1679_v48, %v1235_v23 }
 0x258   : > { %v1233_v11 = vpop.permute.xlu0 %1232 }
 0x259   : > { %v1681_v28 = vsel %vm862_vm10, %v1678_v51, %v1233_v11 }
 0x25a   : > { %v1273_v2 = vpop.permute.xlu1 %1272 }
 0x25b   : > { %v1684_v15 = vsel %vm866_vm12, %v1681_v28, %v1273_v2 }
 0x25c   : > { %v1271_v45 = vpop.permute.xlu0 %1270 }
 0x25d   : > { %v1683_v34 = vsel %vm866_vm12, %v1680_v53, %v1271_v45 }
 0x25e   : > { %v1311_v18 = vpop.permute.xlu1 %1310 }
 0x25f   : > { %v1686_v0 = vsel %vm870_vm11, %v1683_v34, %v1311_v18 }
 0x260   : > { %v1275_v26 = vpop.permute.xlu0 %1274 }
 0x261   : > { %v1685_v46 = vsel %vm866_vm12, %v1682_v24, %v1275_v26  ;;  %v1387_v26 = vrot.slane %v3789_v38, 7 }
 0x262   : > { %v1315_v56 = vpop.permute.xlu1 %1314 }
 0x263   : > { %v1688_v61 = vsel %vm870_vm11, %v1685_v46, %v1315_v56 }
 0x264   : > { %v1313_v43 = vpop.permute.xlu0 %1312 }
 0x265   : > { %v1687_v40 = vsel %vm870_vm11, %v1684_v15, %v1313_v43 }
 0x266   : > { %v1353_v52 = vpop.permute.xlu1 %1352 }
 0x267   : > { %v1690_v27 = vsel %vm874_vm13, %v1687_v40, %v1353_v52 }
 0x268   : > { %v1351_v29 = vpop.permute.xlu0 %1350 }
 0x269   : > { %v1689_v33 = vsel %vm874_vm13, %v1686_v0, %v1351_v29 }
 0x26a   : > { %v1423_v22 = vpop.permute.xlu1 %1422 }
 0x26b   : > { %v1692_v21 = vsel %vm850_vm7, %v4291_v25, %v1423_v22  ;;  %v1388_v22 = vsel %vm220_vm0, %v1387_v26, %v3237_v58 }
 0x26c   : > { %v1355_v39 = vpop.permute.xlu0 %1354 }
 0x26d   : > { %v1691_v1 = vsel %vm874_vm13, %v1688_v61, %v1355_v39 }
 0x26e   : > { %v3929_v13 = vpop.permute.xlu1 %1426 }
 0x26f   : > { %v1694_v7 = vsel %vm850_vm7, %v1388_v22, %v3929_v13 }
 0x270   : > { %v1425_v31 = vpop.permute.xlu0 %1424 }
 0x271   : > { %v1693_v6 = vsel %vm850_vm7, %v1386_v49, %v1425_v31 }
 0x272   : > { %v1465_v36 = vpop.permute.xlu1 %1464 }
 0x273   : > { %v1696_v11 = vsel %vm854_vm8, %v1693_v6, %v1465_v36 }
 0x274   : > { %v1463_v54 = vpop.permute.xlu0 %1462 }
 0x275   : > { %v1695_v37 = vsel %vm854_vm8, %v1692_v21, %v1463_v54 }
 0x276   : > { %v1503_v59 = vpop.permute.xlu1 %1502 }
 0x277   : > { %v1698_v9 = vsel %vm858_vm9, %v1695_v37, %v1503_v59 }
 0x278   : > { %v1467_v19 = vpop.permute.xlu0 %1466 }
 0x279   : > { %v1697_v10 = vsel %vm854_vm8, %v1694_v7, %v1467_v19 }
 0x27a   : > { %v1505_v20 = vpop.permute.xlu1 %1504 }
 0x27b   : > { %v1699_v45 = vsel %vm858_vm9, %v1696_v11, %v1505_v20 }
 0x27c   : > { %v1543_v62 = vpop.permute.xlu0 %1542 }
 0x27d   : > { %1713 = vxpose.xlu0.b32.start [1/3] (short) %v1689_v33, 128  ;;  %v1701_v3 = vsel %vm862_vm10, %v1698_v9, %v1543_v62 }
 0x27e   : > { %v1545_v17 = vpop.permute.xlu1 %1544 }
 0x27f   : > { %v1702_v63 = vsel %vm862_vm10, %v1699_v45, %v1545_v17 }
 0x280   : > { %v1583_v32 = vpop.permute.xlu0 %1582 }
 0x281   : > { %1714 = vxpose.xlu0.b32.cont [2/3] (short) %v1690_v27, 128  ;;  %v1704_v41 = vsel %vm866_vm12, %v1701_v3, %v1583_v32 }
 0x282   : > { %v1507_v35 = vpop.permute.xlu1 %1506 }
 0x283   : > { %v1700_v38 = vsel %vm858_vm9, %v1697_v10, %v1507_v35 }
 0x284   : > { %v1623_v57 = vpop.permute.xlu0 %1622 }
 0x285   : > { %v1707_v5 = vsel %vm870_vm11, %v1704_v41, %v1623_v57  ;;  %1715 = vxpose.xlu0.b32.end [3/3] (short) %v1691_v1, 128 }
 0x286   : > { %v1663_v55 = vpop.permute.xlu1 %1662 }
 0x287   : > { %v1710_v23 = vsel %vm874_vm13, %v1707_v5, %v1663_v55 }
 0x288   : > { %1745 = vxpose.xlu1.b32.start [1/3] (short) %v1710_v23, 128  ;;  %v1585_v2 = vpop.permute.xlu0 %1584 }
 0x289   : > { %v1705_v56 = vsel %vm866_vm12, %v1702_v63, %v1585_v2 }
 0x28a   : > { %v1625_v18 = vpop.permute.xlu1 %1624 }
 0x28b   : > { %v1708_v52 = vsel %vm870_vm11, %v1705_v56, %v1625_v18 }
 0x28c   : > { %v1547_v43 = vpop.permute.xlu0 %1546 }
 0x28d   : > { %v1703_v4 = vsel %vm862_vm10, %v1700_v38, %v1547_v43 }
 0x28e   : > { %v1665_v29 = vpop.permute.xlu1 %1664 }
 0x28f   : > { %v1711_v39 = vsel %vm874_vm13, %v1708_v52, %v1665_v29 }
 0x290   : > { %1746 = vxpose.xlu1.b32.cont [2/3] (short) %v1711_v39, 128  ;;  %v1587_v31 = vpop.permute.xlu0 %1586 }
 0x291   : > { %v1706_v36 = vsel %vm866_vm12, %v1703_v4, %v1587_v31 }
 0x292   : > { %v1667_v44 = vpop.permute.xlu1 %1666 }
 0x294   : > { %v1627_v16 = vpop.permute.xlu0 %1626 }
 0x295   : > { %v1709_v42 = vsel %vm870_vm11, %v1706_v36, %v1627_v16 }
 0x296   : > { %v1712_v58 = vsel %vm874_vm13, %v1709_v42, %v1667_v44 }
 0x297   : > { %1747 = vxpose.xlu1.b32.end [3/3] (short) %v1712_v58, 128 }
 0x2bc   : > { %v3988_v47 = vpop.trf.xlu0 }
 0x2c0   : > { %v3990_v13 = vpop.trf.xlu0 }
 0x2c4   : > { %v3992_v30 = vpop.trf.xlu0 }
 0x2c5   : > { %v3994_v54 = vpop.trf.xlu1 }
 0x2c8   : > { %v3996_v12 = vpop.trf.xlu0 }
 0x2c9   : > { %v3998_v59 = vpop.trf.xlu1 }
 0x2cc   : > { %v4000_v60 = vpop.trf.xlu0 }
 0x2cd   : > { %v4002_v53 = vpop.trf.xlu1 }
 0x2d0   : > { %v4004_v14 = vpop.trf.xlu0 }
 0x2d1   : > { %v4006_v51 = vpop.trf.xlu1 }
 0x2d4   : > { %v4008_v34 = vpop.trf.xlu0 }
 0x2d5   : > { %v4010_v19 = vpop.trf.xlu1 }
 0x2d8   : > { %v4012_v28 = vpop.trf.xlu0 }
 0x2d9   : > { %v4014_v20 = vpop.trf.xlu1 }
 0x2dc   : > { %v4016_v50 = vpop.trf.xlu0 }
 0x2dd   : > { %v4018_v0 = vpop.trf.xlu1 }
 0x2e0   : > { %v4020_v48 = vpop.trf.xlu0 }
 0x2e1   : > { %v4022_v15 = vpop.trf.xlu1 }
 0x2e4   : > { %v4024_v62 = vpop.trf.xlu0 }
 0x2e5   : > { %v4026_v33 = vpop.trf.xlu1 }
 0x2e8   : > { %v4028_v40 = vpop.trf.xlu0 }
 0x2e9   : > { %v4030_v25 = vpop.trf.xlu1 }
 0x2ec   : > { %v4032_v21 = vpop.trf.xlu0 }
 0x2ed   : > { %v4034_v17 = vpop.trf.xlu1 }
 0x2f0   : > { %v4036_v24 = vpop.trf.xlu0 }
 0x2f1   : > { %v4038_v37 = vpop.trf.xlu1 }
 0x2f4   : > { %v4040_v46 = vpop.trf.xlu0 }
 0x2f5   : > { %v4042_v8 = vpop.trf.xlu1 }
 0x2f8   : > { %v4044_v32 = vpop.trf.xlu0 }
 0x2f9   : > { %v4046_v27 = vpop.trf.xlu1 }
 0x2fc   : > { %v1729_v9 = vpop.trf.xlu0 }
 0x2fd   : > { %1809 = vrot.lane.b32.xlu0 %v1729_v9, %s2192_s24  ;;  %v4049_v35 = vpop.trf.xlu1 }
 0x300   : > { %v1730_v61 = vpop.trf.xlu0 }
 0x301   : > { %1811 = vrot.lane.b32.xlu1 %v1730_v61, %s2192_s24  ;;  %v4053_v49 = vpop.trf.xlu1 }
 0x304   : > { %v1731_v3 = vpop.trf.xlu0 }
 0x305   : > { %1813 = vrot.lane.b32.xlu0 %v1731_v3, %s2192_s24 }
 0x308   : > { %v1732_v41 = vpop.trf.xlu0 }
 0x309   : > { %1815 = vrot.lane.b32.xlu1 %v1732_v41, %s2192_s24 }
 0x30b   : > { %v1761_v57 = vpop.trf.xlu1 }
 0x30c   : > { %v1733_v1 = vpop.trf.xlu0 }
 0x30d   : > { %1817 = vrot.lane.b32.xlu0 %v1733_v1, %s2192_s24 }
 0x30f   : > { %v1762_v6 = vpop.trf.xlu1 }
 0x310   : > { %v1734_v5 = vpop.trf.xlu0 }
 0x311   : > { %1819 = vrot.lane.b32.xlu1 %v1734_v5, %s2192_s24 }
 0x313   : > { %v1763_v55 = vpop.trf.xlu1 }
 0x314   : > { %v1735_v23 = vpop.trf.xlu0 }
 0x315   : > { %1821 = vrot.lane.b32.xlu0 %v1735_v23, %s2192_s24 }
 0x317   : > { %v1764_v11 = vpop.trf.xlu1 }
 0x318   : > { %v1736_v2 = vpop.trf.xlu0 }
 0x319   : > { %1823 = vrot.lane.b32.xlu1 %v1736_v2, %s2192_s24 }
 0x31b   : > { %v1765_v45 = vpop.trf.xlu1 }
 0x31c   : > { %v1737_v63 = vpop.trf.xlu0 }
 0x31d   : > { %1825 = vrot.lane.b32.xlu0 %v1737_v63, %s2192_s24 }
 0x31f   : > { %v1766_v18 = vpop.trf.xlu1 }
 0x320   : > { %v1738_v26 = vpop.trf.xlu0 }
 0x321   : > { %1827 = vrot.lane.b32.xlu1 %v1738_v26, %s2192_s24 }
 0x323   : > { %v1767_v56 = vpop.trf.xlu1 }
 0x324   : > { %v1739_v43 = vpop.trf.xlu0 }
 0x325   : > { %1829 = vrot.lane.b32.xlu0 %v1739_v43, %s2192_s24 }
 0x327   : > { %v1768_v52 = vpop.trf.xlu1 }
 0x328   : > { %v1740_v29 = vpop.trf.xlu0 }
 0x329   : > { %1831 = vrot.lane.b32.xlu1 %v1740_v29, %s2192_s24 }
 0x32b   : > { %v1769_v39 = vpop.trf.xlu1 }
 0x32c   : > { %v1741_v22 = vpop.trf.xlu0 }
 0x32d   : > { %1833 = vrot.lane.b32.xlu0 %v1741_v22, %s2192_s24 }
 0x32f   : > { %v1770_v31 = vpop.trf.xlu1 }
 0x330   : > { %v1742_v7 = vpop.trf.xlu0 }
 0x331   : > { %1835 = vrot.lane.b32.xlu1 %v1742_v7, %s2192_s24 }
 0x333   : > { %v1771_v4 = vpop.trf.xlu1 }
 0x334   : > { %v1743_v10 = vpop.trf.xlu0 }
 0x335   : > { %1837 = vrot.lane.b32.xlu0 %v1743_v10, %s2192_s24 }
 0x337   : > { %v1772_v36 = vpop.trf.xlu1 }
 0x338   : > { %v1744_v38 = vpop.trf.xlu0 }
 0x339   : > { %1841 = vrot.lane.b32.xlu0 %v1761_v57, %s2192_s24  ;;  %1839 = vrot.lane.b32.xlu1 %v1744_v38, %s2192_s24 }
 0x33b   : > { %v1773_v16 = vpop.trf.xlu1 }
 0x33d   : > { %1845 = vrot.lane.b32.xlu0 %v1763_v55, %s2192_s24  ;;  %1843 = vrot.lane.b32.xlu1 %v1762_v6, %s2192_s24 }
 0x33f   : > { %v1774_v44 = vpop.trf.xlu1 }
 0x341   : > { %1849 = vrot.lane.b32.xlu0 %v1765_v45, %s2192_s24  ;;  %1847 = vrot.lane.b32.xlu1 %v1764_v11, %s2192_s24 }
 0x343   : > { %v1775_v42 = vpop.trf.xlu1 }
 0x345   : > { %1853 = vrot.lane.b32.xlu0 %v1767_v56, %s2192_s24  ;;  %1851 = vrot.lane.b32.xlu1 %v1766_v18, %s2192_s24 }
 0x347   : > { %v1776_v58 = vpop.trf.xlu1 }
 0x349   : > { %1857 = vrot.lane.b32.xlu0 %v1769_v39, %s2192_s24  ;;  %1855 = vrot.lane.b32.xlu1 %v1768_v52, %s2192_s24 }
 0x34d   : > { %1861 = vrot.lane.b32.xlu0 %v1771_v4, %s2192_s24  ;;  %1859 = vrot.lane.b32.xlu1 %v1770_v31, %s2192_s24 }
 0x351   : > { %1865 = vrot.lane.b32.xlu0 %v1773_v16, %s2192_s24  ;;  %1863 = vrot.lane.b32.xlu1 %v1772_v36, %s2192_s24 }
 0x355   : > { %1869 = vrot.lane.b32.xlu0 %v1775_v42, %s2192_s24  ;;  %1867 = vrot.lane.b32.xlu1 %v1774_v44, %s2192_s24 }
 0x359   : > { %1871 = vrot.lane.b32.xlu1 %v1776_v58, %s2192_s24 }
 0x36f   : > { %v1810_v9 = vpop.permute.xlu0 %1809 }
 0x370   : > { %v1906_v61 = vsel %vm1905_vm14, %v3988_v47, %v1810_v9 }
 0x371   : > { %1939 = vst.msk [vmem:[%s4088_s29] sm:$0xff] %vm1938_vm15, %v1906_v61 }
 0x373   : > { %v1812_v3 = vpop.permute.xlu1 %1811 }
 0x374   : > { %v1907_v41 = vsel %vm1905_vm14, %v3990_v13, %v1812_v3 }
 0x375   : > { %1940 = vst.msk [vmem:[%s4088_s29 + $0x8] sm:$0xff] %vm1938_vm15, %v1907_v41 }
 0x377   : > { %v1814_v57 = vpop.permute.xlu0 %1813 }
 0x378   : > { %v1908_v1 = vsel %vm1905_vm14, %v3992_v30, %v1814_v57 }
 0x379   : > { %1941 = vst.msk [vmem:[%s4088_s29 + $0x10] sm:$0xff] %vm1938_vm15, %v1908_v1 }
 0x37b   : > { %v1816_v6 = vpop.permute.xlu1 %1815 }
 0x37c   : > { %v1909_v47 = vsel %vm1905_vm14, %v3996_v12, %v1816_v6 }
 0x37d   : > { %1942 = vst.msk [vmem:[%s4088_s29 + $0x18] sm:$0xff] %vm1938_vm15, %v1909_v47 }
 0x37f   : > { %v1818_v5 = vpop.permute.xlu0 %1817 }
 0x380   : > { %v1910_v13 = vsel %vm1905_vm14, %v4000_v60, %v1818_v5 }
 0x381   : > { %1943 = vst.msk [vmem:[%s4088_s29 + $0x20] sm:$0xff] %vm1938_vm15, %v1910_v13 }
 0x383   : > { %v1820_v55 = vpop.permute.xlu1 %1819 }
 0x384   : > { %v1911_v30 = vsel %vm1905_vm14, %v4004_v14, %v1820_v55 }
 0x385   : > { %1944 = vst.msk [vmem:[%s4088_s29 + $0x28] sm:$0xff] %vm1938_vm15, %v1911_v30 }
 0x387   : > { %v1822_v23 = vpop.permute.xlu0 %1821 }
 0x388   : > { %v1912_v12 = vsel %vm1905_vm14, %v4008_v34, %v1822_v23 }
 0x389   : > { %1945 = vst.msk [vmem:[%s4088_s29 + $0x30] sm:$0xff] %vm1938_vm15, %v1912_v12 }
 0x38b   : > { %v1824_v11 = vpop.permute.xlu1 %1823 }
 0x38c   : > { %v1913_v60 = vsel %vm1905_vm14, %v4012_v28, %v1824_v11 }
 0x38d   : > { %1946 = vst.msk [vmem:[%s4088_s29 + $0x38] sm:$0xff] %vm1938_vm15, %v1913_v60 }
 0x38f   : > { %v1826_v2 = vpop.permute.xlu0 %1825 }
 0x390   : > { %v1914_v14 = vsel %vm1905_vm14, %v4016_v50, %v1826_v2 }
 0x391   : > { %1947 = vst.msk [vmem:[%s4088_s29 + $0x40] sm:$0xff] %vm1938_vm15, %v1914_v14 }
 0x393   : > { %v1828_v45 = vpop.permute.xlu1 %1827 }
 0x394   : > { %v1915_v34 = vsel %vm1905_vm14, %v4020_v48, %v1828_v45 }
 0x395   : > { %1948 = vst.msk [vmem:[%s4088_s29 + $0x48] sm:$0xff] %vm1938_vm15, %v1915_v34 }
 0x397   : > { %v1830_v63 = vpop.permute.xlu0 %1829 }
 0x398   : > { %v1916_v28 = vsel %vm1905_vm14, %v4024_v62, %v1830_v63 }
 0x399   : > { %1949 = vst.msk [vmem:[%s4088_s29 + $0x50] sm:$0xff] %vm1938_vm15, %v1916_v28 }
 0x39b   : > { %v1832_v18 = vpop.permute.xlu1 %1831 }
 0x39c   : > { %v1917_v50 = vsel %vm1905_vm14, %v4028_v40, %v1832_v18 }
 0x39d   : > { %1950 = vst.msk [vmem:[%s4088_s29 + $0x58] sm:$0xff] %vm1938_vm15, %v1917_v50 }
 0x39f   : > { %v1834_v26 = vpop.permute.xlu0 %1833 }
 0x3a0   : > { %v1918_v48 = vsel %vm1905_vm14, %v4032_v21, %v1834_v26 }
 0x3a1   : > { %1951 = vst.msk [vmem:[%s4088_s29 + $0x60] sm:$0xff] %vm1938_vm15, %v1918_v48 }
 0x3a3   : > { %v1836_v56 = vpop.permute.xlu1 %1835 }
 0x3a4   : > { %v1919_v62 = vsel %vm1905_vm14, %v4036_v24, %v1836_v56 }
 0x3a5   : > { %1952 = vst.msk [vmem:[%s4088_s29 + $0x68] sm:$0xff] %vm1938_vm15, %v1919_v62 }
 0x3a7   : > { %v1838_v43 = vpop.permute.xlu0 %1837 }
 0x3a8   : > { %v1920_v40 = vsel %vm1905_vm14, %v4040_v46, %v1838_v43 }
 0x3a9   : > { %1953 = vst.msk [vmem:[%s4088_s29 + $0x70] sm:$0xff] %vm1938_vm15, %v1920_v40 }
 0x3ab   : > { %v1840_v52 = vpop.permute.xlu1 %1839  ;;  %v1842_v29 = vpop.permute.xlu0 %1841 }
 0x3ac   : > { %v1921_v21 = vsel %vm1905_vm14, %v4044_v32, %v1840_v52  ;;  %v1922_v22 = vsel %vm1905_vm14, %v3994_v54, %v1842_v29 }
 0x3ad   : > { %1954 = vst.msk [vmem:[%s4088_s29 + $0x78] sm:$0xff] %vm1938_vm15, %v1921_v21  ;;  %1955 = vst.msk [vmem:[%s4088_s29 + $0x80] sm:$0xff] %vm1938_vm15, %v1922_v22 }
 0x3af   : > { %v1844_v24 = vpop.permute.xlu1 %1843  ;;  %v1846_v39 = vpop.permute.xlu0 %1845 }
 0x3b0   : > { %v1923_v46 = vsel %vm1905_vm14, %v3998_v59, %v1844_v24  ;;  %v1924_v7 = vsel %vm1905_vm14, %v4002_v53, %v1846_v39 }
 0x3b1   : > { %1956 = vst.msk [vmem:[%s4088_s29 + $0x88] sm:$0xff] %vm1938_vm15, %v1923_v46  ;;  %1957 = vst.msk [vmem:[%s4088_s29 + $0x90] sm:$0xff] %vm1938_vm15, %v1924_v7 }
 0x3b3   : > { %v1848_v32 = vpop.permute.xlu1 %1847  ;;  %v1850_v54 = vpop.permute.xlu0 %1849 }
 0x3b4   : > { %v1925_v31 = vsel %vm1905_vm14, %v4006_v51, %v1848_v32  ;;  %v1926_v10 = vsel %vm1905_vm14, %v4010_v19, %v1850_v54 }
 0x3b5   : > { %1958 = vst.msk [vmem:[%s4088_s29 + $0x98] sm:$0xff] %vm1938_vm15, %v1925_v31  ;;  %1959 = vst.msk [vmem:[%s4088_s29 + $0xa0] sm:$0xff] %vm1938_vm15, %v1926_v10 }
 0x3b7   : > { %v1852_v59 = vpop.permute.xlu1 %1851  ;;  %v1854_v53 = vpop.permute.xlu0 %1853 }
 0x3b8   : > { %v1927_v38 = vsel %vm1905_vm14, %v4014_v20, %v1852_v59  ;;  %v1928_v4 = vsel %vm1905_vm14, %v4018_v0, %v1854_v53 }
 0x3b9   : > { %1960 = vst.msk [vmem:[%s4088_s29 + $0xa8] sm:$0xff] %vm1938_vm15, %v1927_v38  ;;  %1961 = vst.msk [vmem:[%s4088_s29 + $0xb0] sm:$0xff] %vm1938_vm15, %v1928_v4 }
 0x3bb   : > { %v1856_v51 = vpop.permute.xlu1 %1855  ;;  %v1858_v19 = vpop.permute.xlu0 %1857 }
 0x3bc   : > { %v1929_v36 = vsel %vm1905_vm14, %v4022_v15, %v1856_v51  ;;  %v1930_v16 = vsel %vm1905_vm14, %v4026_v33, %v1858_v19 }
 0x3bd   : > { %1962 = vst.msk [vmem:[%s4088_s29 + $0xb8] sm:$0xff] %vm1938_vm15, %v1929_v36  ;;  %1963 = vst.msk [vmem:[%s4088_s29 + $0xc0] sm:$0xff] %vm1938_vm15, %v1930_v16 }
 0x3bf   : > { %v1860_v20 = vpop.permute.xlu1 %1859  ;;  %v1862_v0 = vpop.permute.xlu0 %1861 }
 0x3c0   : > { %v1931_v44 = vsel %vm1905_vm14, %v4030_v25, %v1860_v20  ;;  %v1932_v42 = vsel %vm1905_vm14, %v4034_v17, %v1862_v0 }
 0x3c1   : > { %1964 = vst.msk [vmem:[%s4088_s29 + $0xc8] sm:$0xff] %vm1938_vm15, %v1931_v44  ;;  %1965 = vst.msk [vmem:[%s4088_s29 + $0xd0] sm:$0xff] %vm1938_vm15, %v1932_v42 }
 0x3c3   : > { %v1864_v15 = vpop.permute.xlu1 %1863  ;;  %v1866_v33 = vpop.permute.xlu0 %1865 }
 0x3c4   : > { %v1933_v58 = vsel %vm1905_vm14, %v4038_v37, %v1864_v15  ;;  %v1934_v9 = vsel %vm1905_vm14, %v4042_v8, %v1866_v33 }
 0x3c5   : > { %1966 = vst.msk [vmem:[%s4088_s29 + $0xd8] sm:$0xff] %vm1938_vm15, %v1933_v58  ;;  %1967 = vst.msk [vmem:[%s4088_s29 + $0xe0] sm:$0xff] %vm1938_vm15, %v1934_v9 }
 0x3c7   : > { %v1868_v25 = vpop.permute.xlu1 %1867  ;;  %v1870_v61 = vpop.permute.xlu0 %1869 }
 0x3c8   : > { %v1935_v17 = vsel %vm1905_vm14, %v4046_v27, %v1868_v25  ;;  %v1936_v3 = vsel %vm1905_vm14, %v4049_v35, %v1870_v61 }
 0x3c9   : > { %1968 = vst.msk [vmem:[%s4088_s29 + $0xe8] sm:$0xff] %vm1938_vm15, %v1935_v17  ;;  %1969 = vst.msk [vmem:[%s4088_s29 + $0xf0] sm:$0xff] %vm1938_vm15, %v1936_v3 }
 0x3cb   : > { %v1872_v37 = vpop.permute.xlu1 %1871 }
 0x3cc   : > { %v1937_v8 = vsel %vm1905_vm14, %v4053_v49, %v1872_v37 }
 0x3cd   : > { %1970 = vst.msk [vmem:[%s4088_s29 + $0xf8] sm:$0xff] %vm1938_vm15, %v1937_v8 }
 0x3ce PF: > { %s11_s8 = sadd.s32 1, %s2181_s8   ;;  %s4292_s6 = smov %s2177_s7 }
 0x3cf   : > { %p8_p6 = scmp.ge.s32.totalorder %s11_s8, 4   ;;  %s4293_s7 = smov %s4295_s9 }
 0x3d1   :  { %10 = sbr.rel (!%p8_p6) target bundleno = 2 (0x2), region = 66 }

</bundles_post_ra>
